<compile_context>
chip_gen: v6e
topology: v6e:2x2x1
jax: 0.10.0
libtpu: 0.0.40
codegen_flags: <defaults>
</compile_context>

<pallas_src>
import jax
import jax.numpy as jnp
from jax import lax
from jax.experimental import pallas as pl
from jax.experimental.pallas import tpu as pltpu


def fire_kernel(x_ref, wsq_ref, bsq_ref, w1_ref, b1_ref, w3_ref, b3_ref,
                e1_ref, e3_ref, s_ref):
    # x_ref : (1, H+2, W+2, Cin)  bf16  zero-padded input, resident per image
    # wsq   : (Cin, Csq)          bf16  1x1 squeeze weight
    # w1    : (Csq, C1)           bf16  1x1 expand weight
    # w3    : (9*Csq, C3)         bf16  3x3 expand weight (HWIO, flattened)
    # e1_ref: (1, TH, W, C1)      f32   expand1x1 output strip
    # e3_ref: (1, TH, W, C3)      f32   expand3x3 output strip
    # s_ref : (TH+2, W+2, Csq)    bf16  VMEM scratch: padded squeeze strip
    THp2, Wp2, Csq = s_ref.shape
    TH, W = THp2 - 2, Wp2 - 2
    Cin = x_ref.shape[3]
    C1 = w1_ref.shape[1]
    C3 = w3_ref.shape[1]
    H = pl.num_programs(1) * TH              # unpadded image height

    r = pl.program_id(1)
    row0 = pl.multiple_of(r * TH, TH)        # offset into the padded rows

    # ---- squeeze (1x1 conv) + ReLU on the strip + 1-row halo --------------
    xs = x_ref[:, pl.ds(row0, TH + 2), :, :]            # (1, TH+2, W+2, Cin)
    xm = xs.reshape(THp2 * Wp2, Cin)
    s = jnp.dot(xm, wsq_ref[...], preferred_element_type=jnp.float32)
    s = jnp.maximum(s + bsq_ref[...], 0.0)               # f32
    s3 = s.reshape(THp2, Wp2, Csq)

    # Zero the positions that correspond to the 'SAME' conv zero padding
    # (squeeze of a zero-padded pixel would be ReLU(bias), not 0).
    li = lax.broadcasted_iota(jnp.int32, (THp2, Wp2, Csq), 0) + row0
    ci = lax.broadcasted_iota(jnp.int32, (THp2, Wp2, Csq), 1)
    valid = (li >= 1) & (li <= H) & (ci >= 1) & (ci <= W)
    s3 = jnp.where(valid, s3, 0.0)

    s_ref[...] = s3.astype(jnp.bfloat16)

    # ---- 9 conv taps as static-offset ref slices --------------------------
    taps = []
    for dh in range(3):
        for dw in range(3):
            taps.append(s_ref[dh:dh + TH, dw:dw + W, :])  # (TH, W, Csq) bf16

    # ---- expand1x1 (1x1 conv) + ReLU : center tap == unpadded interior ----
    s_in = taps[4].reshape(TH * W, Csq)
    e1 = jnp.dot(s_in, w1_ref[...], preferred_element_type=jnp.float32)
    e1 = jnp.maximum(e1 + b1_ref[...], 0.0)
    e1_ref[0] = e1.reshape(TH, W, C1).astype(e1_ref.dtype)

    # ---- expand3x3 (3x3 conv, padding=1) + ReLU : one im2col matmul -------
    patches = jnp.concatenate(taps, axis=-1)              # (TH, W, 9*Csq)
    e3 = jnp.dot(patches.reshape(TH * W, 9 * Csq), w3_ref[...],
                 preferred_element_type=jnp.float32)
    e3 = jnp.maximum(e3 + b3_ref[...], 0.0)
    e3_ref[0] = e3.reshape(TH, W, C3).astype(e3_ref.dtype)


def fire_pallas(x_nchw, params):
    """x_nchw: (N, Cin, H, W) float32 -> (N, C1+C3, H, W) float32 (NCHW)."""
    wsq, bsq, w1, b1, w3, b3 = params
    N, Cin, H, W = x_nchw.shape
    Csq, C1, C3 = wsq.shape[1], w1.shape[1], w3.shape[3]

    # Row-strip height: 8 if it divides H and gives >= 2 strips, else whole H.
    TH = 8 if (H % 8 == 0 and H >= 16) else H
    n_strips = H // TH

    # NCHW -> NHWC fused with the 1-pixel zero pad (single HBM pass), bf16.
    x_nhwc = jnp.transpose(x_nchw, (0, 2, 3, 1))
    x_pad = jnp.pad(x_nhwc, ((0, 0), (1, 1), (1, 1), (0, 0))).astype(jnp.bfloat16)

    wsq_b = wsq.astype(jnp.bfloat16)
    w1_b = w1.astype(jnp.bfloat16)
    w3_b = w3.reshape(9 * Csq, C3).astype(jnp.bfloat16)    # HWIO -> (9*Csq, C3)

    e1, e3 = pl.pallas_call(
        fire_kernel,
        out_shape=(jax.ShapeDtypeStruct((N, H, W, C1), jnp.float32),
                   jax.ShapeDtypeStruct((N, H, W, C3), jnp.float32)),
        grid=(N, n_strips),
        in_specs=[
            # Padded image resident across the strip axis (DMA'd once per n).
            pl.BlockSpec((1, H + 2, W + 2, Cin), lambda n, r: (n, 0, 0, 0)),
            pl.BlockSpec((Cin, Csq), lambda n, r: (0, 0)),
            pl.BlockSpec((1, Csq), lambda n, r: (0, 0)),
            pl.BlockSpec((Csq, C1), lambda n, r: (0, 0)),
            pl.BlockSpec((1, C1), lambda n, r: (0, 0)),
            pl.BlockSpec((9 * Csq, C3), lambda n, r: (0, 0)),
            pl.BlockSpec((1, C3), lambda n, r: (0, 0)),
        ],
        out_specs=(
            pl.BlockSpec((1, TH, W, C1), lambda n, r: (n, r, 0, 0)),
            pl.BlockSpec((1, TH, W, C3), lambda n, r: (n, r, 0, 0)),
        ),
        scratch_shapes=[pltpu.VMEM((TH + 2, W + 2, Csq), jnp.bfloat16)],
        compiler_params=pltpu.CompilerParams(
            dimension_semantics=("parallel", "parallel"),
            vmem_limit_bytes=32 * 1024 * 1024),
    )(x_pad, wsq_b, bsq, w1_b, b1, w3_b, b3)

    # Channel concat fused with the NHWC -> NCHW transpose (one XLA op).
    out_nhwc = jnp.concatenate([e1, e3], axis=-1)
    return jnp.transpose(out_nhwc, (0, 3, 1, 2))


def fire_reference(x_nchw, params):
    """Pure-JAX f32 reference matching PyTorch Fire.forward (NCHW in / out)."""
    wsq, bsq, w1, b1, w3, b3 = params
    x = jnp.transpose(x_nchw, (0, 2, 3, 1)).astype(jnp.float32)   # NHWC
    s = jnp.maximum(jnp.einsum('nhwc,cd->nhwd', x, wsq) + bsq[0], 0.0)
    e1 = jnp.maximum(jnp.einsum('nhwc,cd->nhwd', s, w1) + b1[0], 0.0)
    e3 = lax.conv_general_dilated(
        s, w3, window_strides=(1, 1), padding='SAME',
        dimension_numbers=('NHWC', 'HWIO', 'NHWC')) + b3[0]
    e3 = jnp.maximum(e3, 0.0)
    out = jnp.concatenate([e1, e3], axis=-1)
    return jnp.transpose(out, (0, 3, 1, 2))


def make_fire_params(key, inplanes, squeeze_planes, expand1x1_planes, expand3x3_planes):
    ks = jax.random.split(key, 6)
    scale = 0.1
    wsq = scale * jax.random.normal(ks[0], (inplanes, squeeze_planes), jnp.float32)
    bsq = scale * jax.random.normal(ks[1], (1, squeeze_planes), jnp.float32)
    w1 = scale * jax.random.normal(ks[2], (squeeze_planes, expand1x1_planes), jnp.float32)
    b1 = scale * jax.random.normal(ks[3], (1, expand1x1_planes), jnp.float32)
    w3 = scale * jax.random.normal(ks[4], (3, 3, squeeze_planes, expand3x3_planes), jnp.float32)
    b3 = scale * jax.random.normal(ks[5], (1, expand3x3_planes), jnp.float32)
    return (wsq, bsq, w1, b1, w3, b3)


if __name__ == "__main__":
    # Small Fire block: Fire(inplanes=4, squeeze=8, expand1x1=16, expand3x3=16)
    N, Cin, H, W = 2, 4, 16, 16
    Csq, C1, C3 = 8, 16, 16

    key = jax.random.PRNGKey(0)
    kx, kp = jax.random.split(key)
    x = jax.random.normal(kx, (N, Cin, H, W), jnp.float32)        # NCHW, like PyTorch
    params = make_fire_params(kp, Cin, Csq, C1, C3)

    out = jax.block_until_ready(fire_pallas(x, params))
    ref = jax.block_until_ready(fire_reference(x, params))

    assert out.shape == (N, C1 + C3, H, W), out.shape
    # bf16 MXU operands with f32 accumulation -> relaxed tolerance vs f32 ref.
    assert jnp.allclose(out, ref, atol=2e-2, rtol=2e-2), \
        float(jnp.max(jnp.abs(out - ref)))
    print("KERNEL_OK")
</pallas_src>

<mosaic_0001>
module attributes {stable_mosaic.version = 11 : i64} {
  func.func @fire_kernel(%arg0: i32, %arg1: i32, %arg2: memref<1x18x18x4xbf16, #tpu.memory_space<vmem>>, %arg3: memref<4x8xbf16, #tpu.memory_space<vmem>>, %arg4: memref<1x8xf32, #tpu.memory_space<vmem>>, %arg5: memref<8x16xbf16, #tpu.memory_space<vmem>>, %arg6: memref<1x16xf32, #tpu.memory_space<vmem>>, %arg7: memref<72x16xbf16, #tpu.memory_space<vmem>>, %arg8: memref<1x16xf32, #tpu.memory_space<vmem>>, %arg9: memref<1x8x16x16xf32, #tpu.memory_space<vmem>>, %arg10: memref<1x8x16x16xf32, #tpu.memory_space<vmem>>, %arg11: memref<10x18x8xbf16, #tpu.memory_space<vmem>>) attributes {dimension_semantics = [#tpu.dimension_semantics<parallel>, #tpu.dimension_semantics<parallel>], iteration_bounds = array<i64: 2, 2>, scalar_prefetch = 0 : i64, scratch_operands = 1 : i64, tpu.core_type = #tpu.core_type<tc>, window_params = [{transform_indices = @transform_0, window_bounds = array<i64: 1, 18, 18, 4>}, {pipeline_mode = #tpu.pipeline_mode<synchronous>, transform_indices = @transform_1, window_bounds = array<i64: 4, 8>}, {pipeline_mode = #tpu.pipeline_mode<synchronous>, transform_indices = @transform_2, window_bounds = array<i64: 1, 8>}, {pipeline_mode = #tpu.pipeline_mode<synchronous>, transform_indices = @transform_3, window_bounds = array<i64: 8, 16>}, {pipeline_mode = #tpu.pipeline_mode<synchronous>, transform_indices = @transform_4, window_bounds = array<i64: 1, 16>}, {pipeline_mode = #tpu.pipeline_mode<synchronous>, transform_indices = @transform_5, window_bounds = array<i64: 72, 16>}, {pipeline_mode = #tpu.pipeline_mode<synchronous>, transform_indices = @transform_6, window_bounds = array<i64: 1, 16>}, {transform_indices = @transform_7, window_bounds = array<i64: 1, 8, 16, 16>}, {transform_indices = @transform_8, window_bounds = array<i64: 1, 8, 16, 16>}]} {
    %c8_i32 = arith.constant 8 : i32
    %0 = arith.muli %arg1, %c8_i32 : i32
    %1 = tpu.assume_multiple %0, 8 : i32
    %c0 = arith.constant 0 : index
    %2 = arith.index_cast %1 : i32 to index
    %c0_0 = arith.constant 0 : index
    %c0_1 = arith.constant 0 : index
    %3 = vector.load %arg2[%c0, %2, %c0_0, %c0_1] : memref<1x18x18x4xbf16, #tpu.memory_space<vmem>>, vector<1x10x18x4xbf16>
    %4 = vector.shape_cast %3 : vector<1x10x18x4xbf16> to vector<180x4xbf16>
    %c0_2 = arith.constant 0 : index
    %c0_3 = arith.constant 0 : index
    %5 = vector.load %arg3[%c0_2, %c0_3] : memref<4x8xbf16, #tpu.memory_space<vmem>>, vector<4x8xbf16>
    %cst = arith.constant dense<0.000000e+00> : vector<180x8xf32>
    %6 = tpu.matmul %4, %5, %cst {dimension_numbers = #tpu.dot_dimension_numbers<[1], [0], [0], [1], [0, 0, 1, 1], [], []>} : vector<180x4xbf16>, vector<4x8xbf16>, vector<180x8xf32> -> vector<180x8xf32>
    %c0_4 = arith.constant 0 : index
    %c0_5 = arith.constant 0 : index
    %7 = vector.load %arg4[%c0_4, %c0_5] : memref<1x8xf32, #tpu.memory_space<vmem>>, vector<1x8xf32>
    %8 = vector.broadcast %7 : vector<1x8xf32> to vector<180x8xf32>
    %9 = arith.addf %6, %8 : vector<180x8xf32>
    %cst_6 = arith.constant 0.000000e+00 : f32
    %10 = vector.broadcast %cst_6 : f32 to vector<180x8xf32>
    %11 = arith.maximumf %9, %10 : vector<180x8xf32>
    %12 = vector.shape_cast %11 : vector<180x8xf32> to vector<10x18x8xf32>
    %13 = tpu.iota {dimensions = array<i32: 0>} : vector<10x18x8xi32>
    %14 = vector.broadcast %1 : i32 to vector<10x18x8xi32>
    %15 = arith.addi %13, %14 : vector<10x18x8xi32>
    %16 = tpu.iota {dimensions = array<i32: 1>} : vector<10x18x8xi32>
    %c1_i32 = arith.constant 1 : i32
    %17 = vector.broadcast %c1_i32 : i32 to vector<10x18x8xi32>
    %18 = arith.cmpi sge, %15, %17 : vector<10x18x8xi32>
    %c16_i32 = arith.constant 16 : i32
    %19 = vector.broadcast %c16_i32 : i32 to vector<10x18x8xi32>
    %20 = arith.cmpi sle, %15, %19 : vector<10x18x8xi32>
    %21 = arith.andi %18, %20 : vector<10x18x8xi1>
    %c1_i32_7 = arith.constant 1 : i32
    %22 = vector.broadcast %c1_i32_7 : i32 to vector<10x18x8xi32>
    %23 = arith.cmpi sge, %16, %22 : vector<10x18x8xi32>
    %24 = arith.andi %21, %23 : vector<10x18x8xi1>
    %c16_i32_8 = arith.constant 16 : i32
    %25 = vector.broadcast %c16_i32_8 : i32 to vector<10x18x8xi32>
    %26 = arith.cmpi sle, %16, %25 : vector<10x18x8xi32>
    %27 = arith.andi %24, %26 : vector<10x18x8xi1>
    %cst_9 = arith.constant 0.000000e+00 : f32
    %28 = vector.broadcast %cst_9 : f32 to vector<10x18x8xf32>
    %29 = arith.select %27, %12, %28 : vector<10x18x8xi1>, vector<10x18x8xf32>
    %30 = arith.truncf %29 : vector<10x18x8xf32> to vector<10x18x8xbf16>
    %c0_10 = arith.constant 0 : index
    %c0_11 = arith.constant 0 : index
    %c0_12 = arith.constant 0 : index
    %31 = vector.load %arg11[%c0_10, %c0_11, %c0_12] : memref<10x18x8xbf16, #tpu.memory_space<vmem>>, vector<10x18x8xbf16>
    tpu.vector_store %arg11[%c0_10, %c0_11, %c0_12], %30 {strides = array<i32>} : memref<10x18x8xbf16, #tpu.memory_space<vmem>>, vector<10x18x8xbf16>,
    %c0_13 = arith.constant 0 : index
    %c0_14 = arith.constant 0 : index
    %c0_15 = arith.constant 0 : index
    %32 = vector.load %arg11[%c0_13, %c0_14, %c0_15] : memref<10x18x8xbf16, #tpu.memory_space<vmem>>, vector<8x16x8xbf16>
    %c0_16 = arith.constant 0 : index
    %c1 = arith.constant 1 : index
    %c0_17 = arith.constant 0 : index
    %33 = vector.load %arg11[%c0_16, %c1, %c0_17] : memref<10x18x8xbf16, #tpu.memory_space<vmem>>, vector<8x16x8xbf16>
    %c0_18 = arith.constant 0 : index
    %c2 = arith.constant 2 : index
    %c0_19 = arith.constant 0 : index
    %34 = vector.load %arg11[%c0_18, %c2, %c0_19] : memref<10x18x8xbf16, #tpu.memory_space<vmem>>, vector<8x16x8xbf16>
    %c1_20 = arith.constant 1 : index
    %c0_21 = arith.constant 0 : index
    %c0_22 = arith.constant 0 : index
    %35 = vector.load %arg11[%c1_20, %c0_21, %c0_22] : memref<10x18x8xbf16, #tpu.memory_space<vmem>>, vector<8x16x8xbf16>
    %c1_23 = arith.constant 1 : index
    %c1_24 = arith.constant 1 : index
    %c0_25 = arith.constant 0 : index
    %36 = vector.load %arg11[%c1_23, %c1_24, %c0_25] : memref<10x18x8xbf16, #tpu.memory_space<vmem>>, vector<8x16x8xbf16>
    %c1_26 = arith.constant 1 : index
    %c2_27 = arith.constant 2 : index
    %c0_28 = arith.constant 0 : index
    %37 = vector.load %arg11[%c1_26, %c2_27, %c0_28] : memref<10x18x8xbf16, #tpu.memory_space<vmem>>, vector<8x16x8xbf16>
    %c2_29 = arith.constant 2 : index
    %c0_30 = arith.constant 0 : index
    %c0_31 = arith.constant 0 : index
    %38 = vector.load %arg11[%c2_29, %c0_30, %c0_31] : memref<10x18x8xbf16, #tpu.memory_space<vmem>>, vector<8x16x8xbf16>
    %c2_32 = arith.constant 2 : index
    %c1_33 = arith.constant 1 : index
    %c0_34 = arith.constant 0 : index
    %39 = vector.load %arg11[%c2_32, %c1_33, %c0_34] : memref<10x18x8xbf16, #tpu.memory_space<vmem>>, vector<8x16x8xbf16>
    %c2_35 = arith.constant 2 : index
    %c2_36 = arith.constant 2 : index
    %c0_37 = arith.constant 0 : index
    %40 = vector.load %arg11[%c2_35, %c2_36, %c0_37] : memref<10x18x8xbf16, #tpu.memory_space<vmem>>, vector<8x16x8xbf16>
    %41 = vector.shape_cast %36 : vector<8x16x8xbf16> to vector<128x8xbf16>
    %c0_38 = arith.constant 0 : index
    %c0_39 = arith.constant 0 : index
    %42 = vector.load %arg5[%c0_38, %c0_39] : memref<8x16xbf16, #tpu.memory_space<vmem>>, vector<8x16xbf16>
    %cst_40 = arith.constant dense<0.000000e+00> : vector<128x16xf32>
    %43 = tpu.matmul %41, %42, %cst_40 {dimension_numbers = #tpu.dot_dimension_numbers<[1], [0], [0], [1], [0, 0, 1, 1], [], []>} : vector<128x8xbf16>, vector<8x16xbf16>, vector<128x16xf32> -> vector<128x16xf32>
    %c0_41 = arith.constant 0 : index
    %c0_42 = arith.constant 0 : index
    %44 = vector.load %arg6[%c0_41, %c0_42] : memref<1x16xf32, #tpu.memory_space<vmem>>, vector<1x16xf32>
    %45 = vector.broadcast %44 : vector<1x16xf32> to vector<128x16xf32>
    %46 = arith.addf %43, %45 : vector<128x16xf32>
    %cst_43 = arith.constant 0.000000e+00 : f32
    %47 = vector.broadcast %cst_43 : f32 to vector<128x16xf32>
    %48 = arith.maximumf %46, %47 : vector<128x16xf32>
    %49 = vector.shape_cast %48 : vector<128x16xf32> to vector<8x16x16xf32>
    %c0_44 = arith.constant 0 : index
    %c0_45 = arith.constant 0 : index
    %c0_46 = arith.constant 0 : index
    %c0_47 = arith.constant 0 : index
    %50 = vector.load %arg9[%c0_44, %c0_45, %c0_46, %c0_47] : memref<1x8x16x16xf32, #tpu.memory_space<vmem>>, vector<1x8x16x16xf32>
    %51 = vector.shape_cast %50 : vector<1x8x16x16xf32> to vector<8x16x16xf32>
    %52 = vector.shape_cast %49 : vector<8x16x16xf32> to vector<1x8x16x16xf32>
    tpu.vector_store %arg9[%c0_44, %c0_45, %c0_46, %c0_47], %52 {strides = array<i32>} : memref<1x8x16x16xf32, #tpu.memory_space<vmem>>, vector<1x8x16x16xf32>,
    %53 = tpu.concatenate %32, %33, %34, %35, %36, %37, %38, %39, %40 in 2 : vector<8x16x8xbf16>, vector<8x16x8xbf16>, vector<8x16x8xbf16>, vector<8x16x8xbf16>, vector<8x16x8xbf16>, vector<8x16x8xbf16>, vector<8x16x8xbf16>, vector<8x16x8xbf16>, vector<8x16x8xbf16> -> vector<8x16x72xbf16>
    %54 = vector.shape_cast %53 : vector<8x16x72xbf16> to vector<128x72xbf16>
    %c0_48 = arith.constant 0 : index
    %c0_49 = arith.constant 0 : index
    %55 = vector.load %arg7[%c0_48, %c0_49] : memref<72x16xbf16, #tpu.memory_space<vmem>>, vector<72x16xbf16>
    %cst_50 = arith.constant dense<0.000000e+00> : vector<128x16xf32>
    %56 = tpu.matmul %54, %55, %cst_50 {dimension_numbers = #tpu.dot_dimension_numbers<[1], [0], [0], [1], [0, 0, 1, 1], [], []>} : vector<128x72xbf16>, vector<72x16xbf16>, vector<128x16xf32> -> vector<128x16xf32>
    %c0_51 = arith.constant 0 : index
    %c0_52 = arith.constant 0 : index
    %57 = vector.load %arg8[%c0_51, %c0_52] : memref<1x16xf32, #tpu.memory_space<vmem>>, vector<1x16xf32>
    %58 = vector.broadcast %57 : vector<1x16xf32> to vector<128x16xf32>
    %59 = arith.addf %56, %58 : vector<128x16xf32>
    %cst_53 = arith.constant 0.000000e+00 : f32
    %60 = vector.broadcast %cst_53 : f32 to vector<128x16xf32>
    %61 = arith.maximumf %59, %60 : vector<128x16xf32>
    %62 = vector.shape_cast %61 : vector<128x16xf32> to vector<8x16x16xf32>
    %c0_54 = arith.constant 0 : index
    %c0_55 = arith.constant 0 : index
    %c0_56 = arith.constant 0 : index
    %c0_57 = arith.constant 0 : index
    %63 = vector.load %arg10[%c0_54, %c0_55, %c0_56, %c0_57] : memref<1x8x16x16xf32, #tpu.memory_space<vmem>>, vector<1x8x16x16xf32>
    %64 = vector.shape_cast %63 : vector<1x8x16x16xf32> to vector<8x16x16xf32>
    %65 = vector.shape_cast %62 : vector<8x16x16xf32> to vector<1x8x16x16xf32>
    tpu.vector_store %arg10[%c0_54, %c0_55, %c0_56, %c0_57], %65 {strides = array<i32>} : memref<1x8x16x16xf32, #tpu.memory_space<vmem>>, vector<1x8x16x16xf32>,
    return
  }
  func.func @transform_0(%arg0: i32, %arg1: i32) -> (i32, i32, i32, i32) {
    %c0_i32 = arith.constant 0 : i32
    %c0_i32_0 = arith.constant 0 : i32
    %c0_i32_1 = arith.constant 0 : i32
    %c0_i32_2 = arith.constant 0 : i32
    return %arg0, %c0_i32, %c0_i32_0, %c0_i32_1 : i32, i32, i32, i32
  }
  func.func @transform_1(%arg0: i32, %arg1: i32) -> (i32, i32) {
    %c0_i32 = arith.constant 0 : i32
    %c0_i32_0 = arith.constant 0 : i32
    %c0_i32_1 = arith.constant 0 : i32
    return %c0_i32, %c0_i32_0 : i32, i32
  }
  func.func @transform_2(%arg0: i32, %arg1: i32) -> (i32, i32) {
    %c0_i32 = arith.constant 0 : i32
    %c0_i32_0 = arith.constant 0 : i32
    %c0_i32_1 = arith.constant 0 : i32
    return %c0_i32, %c0_i32_0 : i32, i32
  }
  func.func @transform_3(%arg0: i32, %arg1: i32) -> (i32, i32) {
    %c0_i32 = arith.constant 0 : i32
    %c0_i32_0 = arith.constant 0 : i32
    %c0_i32_1 = arith.constant 0 : i32
    return %c0_i32, %c0_i32_0 : i32, i32
  }
  func.func @transform_4(%arg0: i32, %arg1: i32) -> (i32, i32) {
    %c0_i32 = arith.constant 0 : i32
    %c0_i32_0 = arith.constant 0 : i32
    %c0_i32_1 = arith.constant 0 : i32
    return %c0_i32, %c0_i32_0 : i32, i32
  }
  func.func @transform_5(%arg0: i32, %arg1: i32) -> (i32, i32) {
    %c0_i32 = arith.constant 0 : i32
    %c0_i32_0 = arith.constant 0 : i32
    %c0_i32_1 = arith.constant 0 : i32
    return %c0_i32, %c0_i32_0 : i32, i32
  }
  func.func @transform_6(%arg0: i32, %arg1: i32) -> (i32, i32) {
    %c0_i32 = arith.constant 0 : i32
    %c0_i32_0 = arith.constant 0 : i32
    %c0_i32_1 = arith.constant 0 : i32
    return %c0_i32, %c0_i32_0 : i32, i32
  }
  func.func @transform_7(%arg0: i32, %arg1: i32) -> (i32, i32, i32, i32) {
    %c0_i32 = arith.constant 0 : i32
    %c0_i32_0 = arith.constant 0 : i32
    %c0_i32_1 = arith.constant 0 : i32
    return %arg0, %arg1, %c0_i32, %c0_i32_0 : i32, i32, i32, i32
  }
  func.func @transform_8(%arg0: i32, %arg1: i32) -> (i32, i32, i32, i32) {
    %c0_i32 = arith.constant 0 : i32
    %c0_i32_0 = arith.constant 0 : i32
    %c0_i32_1 = arith.constant 0 : i32
    return %arg0, %arg1, %c0_i32, %c0_i32_0 : i32, i32, i32, i32
  }
}

</mosaic_0001>

<bundles_post_ra>
// kernel: tpu_custom_call.1
= control target key start
LH: loop header
LB: loop body
LE: loop exit
PB: predicated region body
PF: predicated region fallthrough
CT: control target
= control target key end

     0   :  { %s6929_s0 = inlined_call_operand.vmem [shape: bf16[2,18,18,4], index: 0, kind: input, shape index: {}]   ;;  %s6930_s1 = inlined_call_operand.vmem [shape: bf16[4,8], index: 1, kind: input, shape index: {}]   ;;  %s6931_s2 = inlined_call_operand.vmem [shape: f32[1,8], index: 2, kind: input, shape index: {}]   ;;  %s6932_s3 = inlined_call_operand.vmem [shape: bf16[8,16], index: 3, kind: input, shape index: {}]   ;;  %s6933_s4 = inlined_call_operand.vmem [shape: f32[1,16], index: 4, kind: input, shape index: {}]   ;;  %s6934_s5 = inlined_call_operand.vmem [shape: bf16[72,16], index: 5, kind: input, shape index: {}]   ;;  %s6935_s6 = inlined_call_operand.vmem [shape: f32[1,16], index: 6, kind: input, shape index: {}]   ;;  %s6936_s7 = inlined_call_operand.hbm [shape: f32[2,16,16,16], index: 7, kind: output, shape index: {0}]   ;;  %s6937_s8 = inlined_call_operand.hbm [shape: f32[2,16,16,16], index: 8, kind: output, shape index: {1}]  }
   0x1   :  { %6946 = sst [smem:[#allocation9_spill]] %s6929_s0 }
   0x2   :  { %6947 = sst [smem:[#allocation10_spill]] %s6930_s1 }
   0x3   :  { %14 = vsyncpa [#allocation4], 0 }
   0x4   :  { %16 = vsyncpa [#allocation4 + $0x1], 0 }
   0x5   :  { %17 = vsyncpa [#allocation6], 0 }
   0x6   :  { %19 = vsyncpa [#allocation6 + $0x1], 0  ;;  %s5325_s27 = smov 0   ;;  %s5327_s28 = smov 0  }
   0x7   :  { %s5329_s29 = smov 0   ;;  %s5331_s30 = smov 0  }
   0x8   :  { %s5333_s9 = smov 0   ;;  %s5335_s10 = smov 0  }
   0x9   :  { %s5337_s11 = smov 0   ;;  %s5339_s12 = smov 0  }
   0xa LB: > { %s4637_s13 = sadd.s32 4294967295, %s5265_s12   ;;  %s4638_s14 = sadd.s32 4294967294, %s5265_s12   ;;  %s5265_s12 = sphi %s5339_s12, %s25_s12   ;;  %s5261_s11 = sphi %s5337_s11, %s7013_s11   ;;  %s5257_s10 = sphi %s5335_s10, %s7012_s10   ;;  %s5253_s9 = sphi %s5333_s9, %s7011_s9   ;;  %s5249_s30 = sphi %s5331_s30, %s7010_s30   ;;  %s5245_s29 = sphi %s5329_s29, %s7009_s29   ;;  %s5241_s28 = sphi %s5327_s28, %s7008_s28   ;;  %s5237_s27 = sphi %s5325_s27, %s7007_s27  }
   0xb   : > { %s34_s15 = sadd.s32 1, %s5257_s10  ;;  %s37_s16 = sadd.s32 1, %s5261_s11 }
   0xc   : > { %p35_p0 = scmp.ge.s32.totalorder %s34_s15, 2  ;;  %p208_p1 = scmp.ne.s32.totalorder %s5245_s29, %s5241_s28 }
   0xd   : > { %p209_p2 = scmp.eq.s32.totalorder %s4637_s13, 3  ;;  %p214_p5 = scmp.ne.s32.totalorder %s5241_s28, %s5237_s27 }
   0xe   : > { %s7015_s15 = smov (%p35_p0, %s34_s15), 0  ;;  %s7017_s16 = smov (!%p35_p0, %s37_s16), %s5261_s11 }
   0xf   : > { %s194_s17 = ssub.s32 %s5257_s10, %s7015_s15  ;;  %p5376_p3 = por %p209_p2, %p208_p1 }
  0x10   : > { %p39_p4 = scmp.ge.s32.totalorder %s7017_s16, 2  ;;  %p215_p6 = scmp.eq.s32.totalorder %s4638_s14, 3 }
  0x11   : > { %p4641_p7 = scmp.ge.s32.totalorder %s5265_s12, 1  ;;  %p287_p9 = scmp.lt.s32.totalorder %s5265_s12, 5 }
  0x12   : > { %s7019_s16 = smov (%p39_p4, %s7017_s16), 0  ;;  %p5385_p8 = por %p215_p6, %p214_p5 }
  0x13   : > { %s193_s20 = ssub.s32 %s5261_s11, %s7019_s16  ;;  %s198_s21 = sadd.s32 1, %s5245_s29 }
  0x14   : > { %s195_s22 = sor.u32 %s194_s17, %s193_s20  ;;  %p288_p10 = pnand %p4641_p7, %p287_p9 }
  0x15   : > { %p196_p11 = scmp.eq.s32.totalorder %s195_s22, 0  ;;  %s6950_s1 = sld [smem:[#allocation10_spill]] (!%p288_p10) }
  0x16   : > { %291 = sbr.rel (%p288_p10) target bundleno = 802 (0x322), region = 48  ;;  %p326_p12 = scmp.lt.s32.totalorder (!%p288_p10), %s5253_s9, 1 }
  0x17   : > { %s5394_s23 = scalar_select %p196_p11, %s5245_s29, %s198_s21  }
  0x18   : > { %s4846_s26 = smul.u32 (!%p288_p10), 96, %s5249_s30  ;;  %s6951_s0 = sld [smem:[#allocation9_spill]] (!%p288_p10) }
  0x19   : > { %s6938_s17 = smov (!%p288_p10), 24   ;;  %s5270_s20 = smov (!%p288_p10), 16  }
  0x1a   : > { %s6940_s24 = smov (!%p288_p10), 48   ;;  %s5274_s25 = smov (!%p288_p10), 32  }
  0x1b   : > { %v1018_v0 = vld [vmem:[%s6950_s1] sm:$0x3]  ;;  %vm1617_vm0 = vcmask 1041408   ;;  %v409_v1 = vlaneseq  ;;  %s327_s13 = scalar_select %p326_p12, %s5253_s9, 1  ;;  %v5267_v3 = vmov 1966171168  }
  0x1c   : > { %4986 = vmatprep.subr.msk.bf16.mxu0 %vm1617_vm0, %v1018_v0  ;;  %v1619_v2 = vsel %vm1617_vm0, %v1018_v0, 0  ;;  %v407_v4 = vunpack.c.l.s4 %v5267_v3  ;;  %vm1580_vm1 = vcmask 31744   ;;  %vm3269_vm2 = vcmask 1043456  }
  0x1d   : > { %4915 = vmatpush3.bf16.msra.mxu0 %v1619_v2  ;;  %v5402_v5 = vshrl.u32 %v409_v1, 7  ;;  %s4990_s14 = smul.u32 216, %s327_s13  ;;  %vm2890_vm7 = vcmask 57344   ;;  %vm2887_vm14 = vcmask 60416  }
  0x1e   : > { %v408_v6 = vunpack.c.0.s8 %v407_v4 }
  0x1f   : > { %s330_s21 = scalar_lea.vmem %s6951_s0, %s4990_s14  ;;  %vm2221_vm8 = vcmp.ge.s32.totalorder %v5402_v5, 1  ;;  %s5275_s14 = smov 64  }
  0x20   : > { %v5408_v7 = vsub.s32 %v408_v6, %v5402_v5  ;;  %s5410_s22 = scalar_lea.vmem %s330_s21, %s4846_s26  ;;  %s4645_s26 = sshll.u32 %s5249_s30, 3 }
  0x21   : > { %v4648_v8 = vld.sshfl [vmem:[%s5410_s22] sm:$0x33 pattern:$0x75316420]  ;;  %s5271_s21 = smov 40  }
  0x22   : > { %v4649_v9 = vld.sshfl [vmem:[%s5410_s22 + $0x4] sm:$0x33 pattern:$0x75316420]  ;;  %v405_v10 = vcombine.high %v4648_v8, %v4648_v8  ;;  %v412_v11 = vrot.slane %v4648_v8, %v5408_v7 }
  0x23   : > { %v429_v12 = vcombine.high %v4649_v9, %v4649_v9  ;;  %v436_v13 = vrot.slane %v4649_v9, %v5408_v7  ;;  %v4650_v14 = vld.sshfl [vmem:[%s5410_s22 + $0x8] sm:$0x1 pattern:$0x75316420] }
  0x24   : > { %v419_v15 = vrot.slane %v405_v10, %v5408_v7  ;;  %v4651_v16 = vld.sshfl [vmem:[%s5410_s22 + $0xc] sm:$0x33 pattern:$0x75316420]  ;;  %v459_v19 = vrot.slane %v4650_v14, %v5408_v7 }
  0x25   : > { %v443_v17 = vrot.slane %v429_v12, %v5408_v7  ;;  %v4652_v18 = vld.sshfl [vmem:[%s5410_s22 + $0x10] sm:$0x33 pattern:$0x75316420]  ;;  %v467_v20 = vcombine.high %v4651_v16, %v4651_v16  ;;  %v474_v21 = vrot.slane %v4651_v16, %v5408_v7 }
  0x26   : > { %v1026_v22 = vcombine.low %v412_v11, %v419_v15  ;;  %v4679_v23 = vcombine.high %v412_v11, %v419_v15  ;;  %v491_v24 = vcombine.high %v4652_v18, %v4652_v18  ;;  %v498_v25 = vrot.slane %v4652_v18, %v5408_v7  ;;  %v4653_v34 = vld.sshfl [vmem:[%s5410_s22 + $0x14] sm:$0x1 pattern:$0x75316420] }
  0x27   : > { %v1028_v26 = vcombine.low %v436_v13, %v443_v17  ;;  %v4680_v27 = vcombine.high %v436_v13, %v443_v17  ;;  %v481_v28 = vrot.slane %v467_v20, %v5408_v7  ;;  %v482_v29 = vcombine.high %v474_v21, %v474_v21  ;;  %v4654_v39 = vld.sshfl [vmem:[%s5410_s22 + $0x18] sm:$0x33 pattern:$0x75316420] }
  0x28   : > { %v1036_v30 = vrot.slane %v1026_v22, %v5408_v7  ;;  %v1043_v31 = vrot.slane %v4679_v23, %v5408_v7  ;;  %v505_v32 = vrot.slane %v491_v24, %v5408_v7  ;;  %v506_v33 = vcombine.high %v498_v25, %v498_v25  ;;  %v4655_v43 = vld.sshfl [vmem:[%s5410_s22 + $0x1c] sm:$0x33 pattern:$0x75316420] }
  0x29   : > { %v1050_v35 = vrot.slane %v1028_v26, %v5408_v7  ;;  %v1057_v36 = vrot.slane %v4680_v27, %v5408_v7  ;;  %v483_v37 = vcombine.high %v481_v28, %v481_v28  ;;  %v1075_v38 = vcombine.low %v459_v19, %v474_v21  ;;  %v4656_v53 = vld.sshfl [vmem:[%s5410_s22 + $0x20] sm:$0x1 pattern:$0x75316420] }
  0x2a   : > { %v1058_v40 = vcombine.low %v1036_v30, %v1043_v31  ;;  %v1076_v41 = vcombine.low %v481_v28, %v482_v29  ;;  %v1078_v42 = vcombine.low %v505_v32, %v506_v33  ;;  %v507_v44 = vcombine.high %v505_v32, %v505_v32  ;;  %v4657_v62 = vld.sshfl [vmem:[%s5410_s22 + $0x24] sm:$0x33 pattern:$0x75316420] }
  0x2b   : > { %v1059_v45 = vcombine.low %v1050_v35, %v1057_v36  ;;  %v1077_v46 = vcombine.low %v483_v37, %v498_v25  ;;  %v1085_v47 = vrot.slane %v1075_v38, %v5408_v7  ;;  %v521_v48 = vrot.slane %v4653_v34, %v5408_v7  ;;  %v4658_v2 = vld.sshfl [vmem:[%s5410_s22 + $0x28] sm:$0x33 pattern:$0x75316420] }
  0x2c   : > { %v1066_v49 = vrot.slane %v1058_v40, %v5408_v7  ;;  %v1092_v50 = vrot.slane %v1076_v41, %v5408_v7  ;;  %v1106_v51 = vrot.slane %v1078_v42, %v5408_v7  ;;  %v529_v52 = vcombine.high %v4654_v39, %v4654_v39  ;;  %v4659_v22 = vld.sshfl [vmem:[%s5410_s22 + $0x2c] sm:$0x1 pattern:$0x75316420] }
  0x2d   : > { %v1073_v54 = vrot.slane %v1059_v45, %v5408_v7  ;;  %v1099_v55 = vrot.slane %v1077_v46, %v5408_v7  ;;  %v536_v56 = vrot.slane %v4654_v39, %v5408_v7  ;;  %v553_v57 = vcombine.high %v4655_v43, %v4655_v43  ;;  %v4660_v26 = vld.sshfl [vmem:[%s5410_s22 + $0x30] sm:$0x33 pattern:$0x75316420] }
  0x2e   : > { %v1107_v58 = vcombine.low %v1085_v47, %v1092_v50  ;;  %v543_v59 = vrot.slane %v529_v52, %v5408_v7  ;;  %v560_v60 = vrot.slane %v4655_v43, %v5408_v7  ;;  %v1124_v61 = vcombine.low %v507_v44, %v521_v48  ;;  %v4661_v36 = vld.sshfl [vmem:[%s5410_s22 + $0x34] sm:$0x33 pattern:$0x75316420] }
  0x2f   : > { %v1074_v63 = vcombine.low %v1066_v49, %v1073_v54  ;;  %v1108_v0 = vcombine.low %v1099_v55, %v1106_v51  ;;  %v567_v1 = vrot.slane %v553_v57, %v5408_v7  ;;  %v583_v3 = vrot.slane %v4656_v53, %v5408_v7  ;;  %v4662_v45 = vld.sshfl [vmem:[%s5410_s22 + $0x38] sm:$0x1 pattern:$0x75316420] }
  0x30   : > { %v1115_v4 = vrot.slane %v1107_v58, %v5408_v7  ;;  %v1125_v6 = vcombine.low %v536_v56, %v543_v59  ;;  %v4681_v8 = vcombine.high %v536_v56, %v543_v59  ;;  %v1134_v9 = vrot.slane %v1124_v61, %v5408_v7  ;;  %v4663_v49 = vld.sshfl [vmem:[%s5410_s22 + $0x3c] sm:$0x33 pattern:$0x75316420] }
  0x31   : > { %4916 = vmatprep.mubr.msk.bf16.mxu0 %vm1580_vm1, %v1074_v63  ;;  %v1122_v10 = vrot.slane %v1108_v0, %v5408_v7  ;;  %v1127_v11 = vcombine.low %v560_v60, %v567_v1  ;;  %v591_v12 = vcombine.high %v4657_v62, %v4657_v62  ;;  %v598_v13 = vrot.slane %v4657_v62, %v5408_v7 }
  0x32   : > { %v1141_v14 = vrot.slane %v1125_v6, %v5408_v7  ;;  %v1148_v15 = vrot.slane %v4681_v8, %v5408_v7  ;;  %v622_v16 = vrot.slane %v4658_v2, %v5408_v7  ;;  %v4682_v17 = vcombine.high %v560_v60, %v567_v1 }
  0x33   : > { %v1123_v18 = vcombine.low %v1115_v4, %v1122_v10  ;;  %v1155_v19 = vrot.slane %v1127_v11, %v5408_v7  ;;  %v605_v20 = vrot.slane %v591_v12, %v5408_v7  ;;  %v606_v21 = vcombine.high %v598_v13, %v598_v13  ;;  %v4665_v10 = vld.sshfl [vmem:[%s5410_s22 + $0x44] sm:$0x1 pattern:$0x75316420] }
  0x34   : > { %v1156_v23 = vcombine.low %v1134_v9, %v1141_v14  ;;  %v1174_v24 = vcombine.low %v583_v3, %v598_v13  ;;  %v1183_v25 = vrot.slane %v4682_v17, %v5408_v7  ;;  %v615_v27 = vcombine.high %v4658_v2, %v4658_v2  ;;  %v4664_v3 = vld.sshfl [vmem:[%s5410_s22 + $0x40] sm:$0x33 pattern:$0x75316420] }
  0x35   : > { %4917 = vmatmul.mubr.msk.bf16.vlgmr.msra.gmra.mxu0 %vm1580_vm1, %v1123_v18  ;;  %v1157_v28 = vcombine.low %v1148_v15, %v1155_v19  ;;  %v607_v29 = vcombine.high %v605_v20, %v605_v20  ;;  %v1175_v30 = vcombine.low %v605_v20, %v606_v21  ;;  %v630_v31 = vcombine.high %v622_v16, %v622_v16  ;;  %v4666_v15 = vld.sshfl [vmem:[%s5410_s22 + $0x48] sm:$0x33 pattern:$0x75316420] }
  0x36   : > { %v1164_v32 = vrot.slane %v1156_v23, %v5408_v7  ;;  %v1190_v33 = vrot.slane %v1174_v24, %v5408_v7  ;;  %v629_v34 = vrot.slane %v615_v27, %v5408_v7  ;;  %v645_v35 = vrot.slane %v4659_v22, %v5408_v7 }
  0x37   : > { %v1171_v37 = vrot.slane %v1157_v28, %v5408_v7  ;;  %v1176_v38 = vcombine.low %v607_v29, %v622_v16  ;;  %v1197_v39 = vrot.slane %v1175_v30, %v5408_v7  ;;  %v653_v40 = vcombine.high %v4660_v26, %v4660_v26  ;;  %v4667_v28 = vld.sshfl [vmem:[%s5410_s22 + $0x4c] sm:$0x33 pattern:$0x75316420] }
  0x38   : > { %v1205_v41 = vcombine.low %v1183_v25, %v1190_v33  ;;  %v631_v42 = vcombine.high %v629_v34, %v629_v34  ;;  %v660_v43 = vrot.slane %v4660_v26, %v5408_v7  ;;  %v1222_v44 = vcombine.low %v629_v34, %v630_v31  ;;  %v4668_v33 = vld.sshfl [vmem:[%s5410_s22 + $0x50] sm:$0x1 pattern:$0x75316420] }
  0x39   : > { %v1172_v46 = vcombine.low %v1164_v32, %v1171_v37  ;;  %v1204_v47 = vrot.slane %v1176_v38, %v5408_v7  ;;  %v667_v48 = vrot.slane %v653_v40, %v5408_v7  ;;  %v677_v50 = vcombine.high %v4661_v36, %v4661_v36  ;;  %v4669_v38 = vld.sshfl [vmem:[%s5410_s22 + $0x54] sm:$0x33 pattern:$0x75316420] }
  0x3a   : > { %v1213_v51 = vrot.slane %v1205_v41, %v5408_v7  ;;  %v1223_v52 = vcombine.low %v631_v42, %v645_v35  ;;  %v1232_v53 = vrot.slane %v1222_v44, %v5408_v7  ;;  %v684_v54 = vrot.slane %v4661_v36, %v5408_v7 }
  0x3b   : > { %4920 = vmatprep.mubr.msk.bf16.mxu0 %vm1580_vm1, %v1172_v46  ;;  %v1206_v55 = vcombine.low %v1197_v39, %v1204_v47  ;;  %v1224_v56 = vcombine.low %v660_v43, %v667_v48  ;;  %v4683_v57 = vcombine.high %v660_v43, %v667_v48  ;;  %v691_v58 = vrot.slane %v677_v50, %v5408_v7 }
  0x3c   : > { %v1239_v59 = vrot.slane %v1223_v52, %v5408_v7  ;;  %v707_v60 = vrot.slane %v4662_v45, %v5408_v7  ;;  %v715_v61 = vcombine.high %v4663_v49, %v4663_v49  ;;  %v722_v62 = vrot.slane %v4663_v49, %v5408_v7 }
  0x3d   : > { %v1220_v63 = vrot.slane %v1206_v55, %v5408_v7  ;;  %v1246_v0 = vrot.slane %v1224_v56, %v5408_v7  ;;  %v1253_v1 = vrot.slane %v4683_v57, %v5408_v7  ;;  %v1271_v2 = vcombine.low %v684_v54, %v691_v58 }
  0x3e   : > { %v1254_v4 = vcombine.low %v1232_v53, %v1239_v59  ;;  %v729_v6 = vrot.slane %v715_v61, %v5408_v7  ;;  %v730_v8 = vcombine.high %v722_v62, %v722_v62  ;;  %v4684_v9 = vcombine.high %v684_v54, %v691_v58  ;;  %v4670_v59 = vld.sshfl [vmem:[%s5410_s22 + $0x58] sm:$0x33 pattern:$0x75316420] }
  0x3f   : > { %v1221_v11 = vcombine.low %v1213_v51, %v1220_v63  ;;  %v1255_v12 = vcombine.low %v1246_v0, %v1253_v1  ;;  %v1273_v13 = vcombine.low %v707_v60, %v722_v62  ;;  %v1281_v14 = vrot.slane %v1271_v2, %v5408_v7  ;;  %v4671_v62 = vld.sshfl [vmem:[%s5410_s22 + $0x5c] sm:$0x1 pattern:$0x75316420] }
  0x40   : > { %v1262_v16 = vrot.slane %v1254_v4, %v5408_v7  ;;  %v1274_v17 = vcombine.low %v729_v6, %v730_v8  ;;  %v1288_v18 = vrot.slane %v4684_v9, %v5408_v7  ;;  %v731_v19 = vcombine.high %v729_v6, %v729_v6 }
  0x41   : > { %4921 = vmatmul.mubr.msk.bf16.gmra.mxu0 %vm1580_vm1, %v1221_v11  ;;  %v1269_v20 = vrot.slane %v1255_v12, %v5408_v7  ;;  %v1295_v21 = vrot.slane %v1273_v13, %v5408_v7  ;;  %v739_v22 = vcombine.high %v4664_v3, %v4664_v3  ;;  %v746_v23 = vrot.slane %v4664_v3, %v5408_v7  ;;  %v4672_v11 = vld.sshfl [vmem:[%s5410_s22 + $0x60] sm:$0x33 pattern:$0x75316420] }
  0x42   : > { %v1302_v24 = vrot.slane %v1274_v17, %v5408_v7  ;;  %v1303_v25 = vcombine.low %v1281_v14, %v1288_v18  ;;  %v769_v26 = vrot.slane %v4665_v10, %v5408_v7  ;;  %v777_v27 = vcombine.high %v4666_v15, %v4666_v15 }
  0x43   : > { %v1270_v29 = vcombine.low %v1262_v16, %v1269_v20  ;;  %v753_v30 = vrot.slane %v739_v22, %v5408_v7  ;;  %v754_v31 = vcombine.high %v746_v23, %v746_v23  ;;  %v784_v32 = vrot.slane %v4666_v15, %v5408_v7  ;;  %v4673_v20 = vld.sshfl [vmem:[%s5410_s22 + $0x64] sm:$0x33 pattern:$0x75316420] }
  0x44   : > { %v1304_v34 = vcombine.low %v1295_v21, %v1302_v24  ;;  %v1311_v35 = vrot.slane %v1303_v25, %v5408_v7  ;;  %v791_v36 = vrot.slane %v777_v27, %v5408_v7  ;;  %v1320_v37 = vcombine.low %v731_v19, %v746_v23 }
  0x45   : > { %4924 = vmatprep.mubr.msk.bf16.mxu0 %vm1580_vm1, %v1270_v29  ;;  %v755_v39 = vcombine.high %v753_v30, %v753_v30  ;;  %v1321_v40 = vcombine.low %v753_v30, %v754_v31  ;;  %v801_v41 = vcombine.high %v4667_v28, %v4667_v28  ;;  %v808_v42 = vrot.slane %v4667_v28, %v5408_v7  ;;  %v4674_v29 = vld.sshfl [vmem:[%s5410_s22 + $0x68] sm:$0x1 pattern:$0x75316420] }
  0x46   : > { %v1318_v43 = vrot.slane %v1304_v34, %v5408_v7  ;;  %v1323_v44 = vcombine.low %v784_v32, %v791_v36  ;;  %v1330_v45 = vrot.slane %v1320_v37, %v5408_v7  ;;  %v831_v46 = vrot.slane %v4668_v33, %v5408_v7  ;;  %v4675_v34 = vld.sshfl [vmem:[%s5410_s22 + $0x6c] sm:$0x33 pattern:$0x75316420] }
  0x47   : > { %v1322_v47 = vcombine.low %v755_v39, %v769_v26  ;;  %v1337_v48 = vrot.slane %v1321_v40, %v5408_v7  ;;  %v815_v49 = vrot.slane %v801_v41, %v5408_v7  ;;  %v846_v50 = vrot.slane %v4669_v38, %v5408_v7 }
  0x48   : > { %v1319_v51 = vcombine.low %v1311_v35, %v1318_v43  ;;  %v1351_v52 = vrot.slane %v1323_v44, %v5408_v7  ;;  %v4685_v53 = vcombine.high %v784_v32, %v791_v36  ;;  %v839_v54 = vcombine.high %v4669_v38, %v4669_v38 }
  0x49   : > { %v1344_v55 = vrot.slane %v1322_v47, %v5408_v7  ;;  %v1352_v56 = vcombine.low %v1330_v45, %v1337_v48  ;;  %v1370_v57 = vcombine.low %v808_v42, %v815_v49  ;;  %v4686_v58 = vcombine.high %v808_v42, %v815_v49  ;;  %v4676_v42 = vld.sshfl [vmem:[%s5410_s22 + $0x70] sm:$0x33 pattern:$0x75316420] }
  0x4a   : > { %4925 = vmatmul.mubr.msk.bf16.gmra.mxu0 %vm1580_vm1, %v1319_v51  ;;  %v1372_v60 = vcombine.low %v831_v46, %v846_v50  ;;  %v1379_v61 = vrot.slane %v4685_v53, %v5408_v7  ;;  %v853_v63 = vrot.slane %v839_v54, %v5408_v7  ;;  %v854_v0 = vcombine.high %v846_v50, %v846_v50 }
  0x4b   : > { %v1353_v1 = vcombine.low %v1344_v55, %v1351_v52  ;;  %v1360_v2 = vrot.slane %v1352_v56, %v5408_v7  ;;  %v1386_v3 = vrot.slane %v1370_v57, %v5408_v7  ;;  %v1393_v4 = vrot.slane %v4686_v58, %v5408_v7 }
  0x4c   : > { %v1400_v6 = vrot.slane %v1372_v60, %v5408_v7  ;;  %v855_v8 = vcombine.high %v853_v63, %v853_v63  ;;  %v863_v9 = vcombine.high %v4670_v59, %v4670_v59  ;;  %v870_v10 = vrot.slane %v4670_v59, %v5408_v7 }
  0x4d   : > { %v1367_v12 = vrot.slane %v1353_v1, %v5408_v7  ;;  %v1401_v13 = vcombine.low %v1379_v61, %v1386_v3  ;;  %v893_v14 = vrot.slane %v4671_v62, %v5408_v7  ;;  %v1418_v15 = vcombine.low %v853_v63, %v854_v0  ;;  %v4677_v0 = vld.sshfl [vmem:[%s5410_s22 + $0x74] sm:$0x1 pattern:$0x75316420]  ;;  %s6942_s22 = smov 8  }
  0x4e   : > { %v1402_v16 = vcombine.low %v1393_v4, %v1400_v6  ;;  %v877_v17 = vrot.slane %v863_v9, %v5408_v7  ;;  %v878_v18 = vcombine.high %v870_v10, %v870_v10  ;;  %v1419_v19 = vcombine.low %v855_v8, %v870_v10 }
  0x4f   : > { %v1368_v21 = vcombine.low %v1360_v2, %v1367_v12  ;;  %v1409_v22 = vrot.slane %v1401_v13, %v5408_v7  ;;  %v1428_v23 = vrot.slane %v1418_v15, %v5408_v7  ;;  %v901_v24 = vcombine.high %v4672_v11, %v4672_v11 }
  0x50   : > { %v1416_v25 = vrot.slane %v1402_v16, %v5408_v7  ;;  %v879_v26 = vcombine.high %v877_v17, %v877_v17  ;;  %v1420_v27 = vcombine.low %v877_v17, %v878_v18  ;;  %v1435_v28 = vrot.slane %v1419_v19, %v5408_v7 }
  0x51   : > { %4928 = vmatprep.mubr.msk.bf16.mxu0 %vm1580_vm1, %v1368_v21  ;;  %v908_v30 = vrot.slane %v4672_v11, %v5408_v7  ;;  %v915_v31 = vrot.slane %v901_v24, %v5408_v7  ;;  %v925_v32 = vcombine.high %v4673_v20, %v4673_v20  ;;  %v932_v33 = vrot.slane %v4673_v20, %v5408_v7 }
  0x52   : > { %v1417_v35 = vcombine.low %v1409_v22, %v1416_v25  ;;  %v1421_v36 = vcombine.low %v879_v26, %v893_v14  ;;  %v1442_v37 = vrot.slane %v1420_v27, %v5408_v7  ;;  %v1450_v38 = vcombine.low %v1428_v23, %v1435_v28  ;;  %v3212_v26 = vld [vmem:[%s6932_s3] sm:$0xf] }
  0x53   : > { %v939_v39 = vrot.slane %v925_v32, %v5408_v7  ;;  %v1467_v40 = vcombine.low %v908_v30, %v915_v31  ;;  %v4687_v41 = vcombine.high %v908_v30, %v915_v31  ;;  %v955_v43 = vrot.slane %v4674_v29, %v5408_v7  ;;  %4987 = vmatprep.subr.msk.bf16.mxu0 %vm3269_vm2, %v3212_v26  ;;  %v5584_v31 = vld [vmem:[%s6931_s2] ss:$0 sm:$0xff] }
  0x54   : > { %4929 = vmatmul.mubr.msk.bf16.gmra.mxu0 %vm1580_vm1, %v1417_v35  ;;  %v1449_v44 = vrot.slane %v1421_v36, %v5408_v7  ;;  %v1458_v45 = vrot.slane %v1450_v38, %v5408_v7  ;;  %v963_v46 = vcombine.high %v4675_v34, %v4675_v34  ;;  %v970_v47 = vrot.slane %v4675_v34, %v5408_v7 }
  0x55   : > { %v1469_v48 = vcombine.low %v932_v33, %v939_v39  ;;  %v4688_v49 = vcombine.high %v932_v33, %v939_v39  ;;  %v1477_v50 = vrot.slane %v1467_v40, %v5408_v7  ;;  %v1484_v51 = vrot.slane %v4687_v41, %v5408_v7  ;;  %4988 = vmatprep.subr.msk.bf16.mxu1 %vm3269_vm2, %v3212_v26 }
  0x56   : > { %v1451_v52 = vcombine.low %v1442_v37, %v1449_v44  ;;  %v977_v53 = vrot.slane %v963_v46, %v5408_v7  ;;  %v978_v54 = vcombine.high %v970_v47, %v970_v47  ;;  %v987_v55 = vcombine.high %v4676_v42, %v4676_v42 }
  0x57   : > { %v1491_v56 = vrot.slane %v1469_v48, %v5408_v7  ;;  %v1498_v57 = vrot.slane %v4688_v49, %v5408_v7  ;;  %v1499_v58 = vcombine.low %v1477_v50, %v1484_v51  ;;  %v994_v59 = vrot.slane %v4676_v42, %v5408_v7 }
  0x58   : > { %v1465_v60 = vrot.slane %v1451_v52, %v5408_v7  ;;  %v979_v61 = vcombine.high %v977_v53, %v977_v53  ;;  %v1001_v62 = vrot.slane %v987_v55, %v5408_v7  ;;  %v1516_v63 = vcombine.low %v955_v43, %v970_v47 }
  0x59   : > { %v1500_v1 = vcombine.low %v1491_v56, %v1498_v57  ;;  %v1507_v2 = vrot.slane %v1499_v58, %v5408_v7  ;;  %v1002_v3 = vcombine.high %v994_v59, %v994_v59  ;;  %v1517_v4 = vcombine.low %v977_v53, %v978_v54 }
  0x5a   : > { %v1466_v6 = vcombine.low %v1458_v45, %v1465_v60  ;;  %v1518_v8 = vcombine.low %v979_v61, %v994_v59  ;;  %v1526_v9 = vrot.slane %v1516_v63, %v5408_v7  ;;  %v1003_v10 = vcombine.high %v1001_v62, %v1001_v62 }
  0x5b   : > { %v1514_v11 = vrot.slane %v1500_v1, %v5408_v7  ;;  %v1519_v12 = vcombine.low %v1001_v62, %v1002_v3  ;;  %v1533_v13 = vrot.slane %v1517_v4, %v5408_v7  ;;  %v1017_v14 = vrot.slane %v4677_v0, %v5408_v7 }
  0x5c   : > { %4932 = vmatprep.mubr.msk.bf16.mxu0 %vm1580_vm1, %v1466_v6  ;;  %v1540_v15 = vrot.slane %v1518_v8, %v5408_v7  ;;  %v3271_v27 = vsel %vm3269_vm2, %v3212_v26, 0  ;;  %v5268_v28 = vmov 1983009808   ;;  %v5579_v30 = vstv %s4645_s26  ;;  %s6998_s26 = smov 24  }
  0x5d   : > { %v1515_v16 = vcombine.low %v1507_v2, %v1514_v11  ;;  %v1547_v17 = vrot.slane %v1519_v12, %v5408_v7  ;;  %v1548_v18 = vcombine.low %v1526_v9, %v1533_v13  ;;  %v1565_v19 = vcombine.low %v1003_v10, %v1017_v14  ;;  %4941 = vmatpush3.bf16.msra.mxu0 %v3271_v27 }
  0x5e   : > { %4985 = vmatpush3.bf16.msra.mxu1 %v3271_v27  ;;  %v1797_v29 = vunpack.c.l.s4 %v5268_v28  ;;  %v5587_v32 = vadd.s32 16, %v5402_v5  ;;  %vm2191_vm3 = vcmp.ge.s32.totalorder %v5579_v30, 1  ;;  %vm2201_vm4 = vcmp.le.s32.totalorder %v5579_v30, 16 }
  0x5f   : > { %4933 = vmatmul.mubr.msk.bf16.gmra.mxu0 %vm1580_vm1, %v1515_v16  ;;  %v1549_v20 = vcombine.low %v1540_v15, %v1547_v17  ;;  %v1556_v21 = vrot.slane %v1548_v18, %v5408_v7  ;;  %v1572_v22 = vrot.slane %v1565_v19, %v5408_v7  ;;  %v2178_v34 = vadd.s32 1, %v5579_v30  ;;  %vm5596_vm5 = vmand %vm2191_vm3, %vm2201_vm4 }
  0x60   : > { %vm2256_vm6 = vcmp.le.s32.totalorder %v5587_v32, 16  ;;  %v5603_v41 = vadd.s32 2, %v5579_v30  ;;  %v5617_v49 = vadd.s32 3, %v5579_v30  ;;  %v5620_v50 = vadd.s32 4, %v5579_v30 }
  0x61   : > { %v1563_v23 = vrot.slane %v1549_v20, %v5408_v7  ;;  %v1579_v25 = vrot.slane %v1572_v22, %v5408_v7  ;;  %v1798_v7 = vunpack.c.0.s8 %v1797_v29  ;;  %vm2192_vm9 = vcmp.ge.s32.totalorder %v2178_v34, 1  ;;  %vm5612_vm11 = vmand %vm5596_vm5, %vm2256_vm6 }
  0x62   : > { %vm2202_vm10 = vcmp.le.s32.totalorder %v2178_v34, 16  ;;  %v5623_v51 = vadd.s32 5, %v5579_v30  ;;  %v5626_v52 = vadd.s32 6, %v5579_v30  ;;  %vm2193_vm12 = vcmp.ge.s32.totalorder %v5603_v41, 1 }
  0x63   : > { %v1564_v24 = vcombine.low %v1556_v21, %v1563_v23  ;;  %v5594_v36 = vsub.s32 %v1798_v7, %v5402_v5  ;;  %vm2203_vm13 = vcmp.le.s32.totalorder %v5603_v41, 16  ;;  %v5635_v60 = vadd.s32 7, %v5579_v30  ;;  %vm5649_vm15 = vmand %vm2192_vm9, %vm2202_vm10 }
  0x64   : > { %v5643_v10 = vadd.s32 9, %v5579_v30  ;;  %vm5664_vm0 = vmand %vm5649_vm15, %vm2221_vm8  ;;  %vm2194_vm3 = vcmp.ge.s32.totalorder %v5617_v49, 1  ;;  %vm2204_vm4 = vcmp.le.s32.totalorder %v5617_v49, 16 }
  0x65   : > { %4936 = vmatprep.mubr.msk.bf16.mxu0 %vm1580_vm1, %v1564_v24  ;;  %vm5692_vm9 = vmand %vm2193_vm12, %vm2203_vm13  ;;  %vm2195_vm12 = vcmp.ge.s32.totalorder %v5620_v50, 1  ;;  %vm2205_vm13 = vcmp.le.s32.totalorder %v5620_v50, 16 }
  0x66   : > { %vm5707_vm10 = vmand %vm5692_vm9, %vm2256_vm6 }
  0x67   : > { %4937 = vmatmul.mubr.msk.bf16.gmra.mxu0 %vm1580_vm1, %v1579_v25  ;;  %vm5673_vm1 = vmand %vm5596_vm5, %vm2221_vm8 }
  0xf5   : > { %v4918_v33 = vpop.f32.mrf.mxu0 }
  0xf6   : > { %v1664_v35 = vadd.f32 %v4918_v33, %v5584_v31 }
  0xf7   : > { %v1655_v37 = vpop.f32.mrf.mxu0 }
  0xf8   : > { %v1751_v38 = vmax.f32 %v1664_v35, 0.0  ;;  %v1656_v40 = vadd.f32 %v5584_v31, %v1655_v37 }
  0xf9   : > { %v4919_v42 = vpop.f32.mrf.mxu0 }
  0xfa   : > { %v1829_v43 = vcombine.high %v1751_v38, %v1751_v38  ;;  %v1836_v44 = vrot.slane %v1751_v38, %v5594_v36  ;;  %v1749_v45 = vmax.f32 %v1656_v40, 0.0  ;;  %v1667_v46 = vadd.f32 %v4919_v42, %v5584_v31 }
  0xfb   : > { %v1658_v48 = vpop.f32.mrf.mxu0  ;;  %v5681_v40 = vadd.s32 8, %v5579_v30 }
  0xfc   : > { %v1843_v53 = vrot.slane %v1829_v43, %v5594_v36  ;;  %v1844_v54 = vcombine.high %v1836_v44, %v1836_v44  ;;  %v2327_v55 = vrot.slane %v1836_v44, %v5594_v36  ;;  %v1795_v56 = vcombine.high %v1749_v45, %v1749_v45 }
  0xfd   : > { %v1802_v57 = vrot.slane %v1749_v45, %v5594_v36  ;;  %v1752_v58 = vmax.f32 %v1667_v46, 0.0  ;;  %v1659_v59 = vadd.f32 %v5584_v31, %v1658_v48 }
  0xfe   : > { %v2328_v61 = vcombine.low %v1844_v54, %v1843_v53  ;;  %v2729_v62 = vsel %vm5612_vm11, %v2327_v55, 0.0  ;;  %v1809_v63 = vrot.slane %v1795_v56, %v5594_v36  ;;  %v1845_v0 = vcombine.high %v1843_v53, %v1843_v53  ;;  %vm2262_vm11 = vmand %vm5649_vm15, %vm2256_vm6 }
  0xff   : > { %v4849_v1 = vpack.c.bf16 %v2729_v62, %v2729_v62  ;;  %v1810_v2 = vcombine.high %v1802_v57, %v1802_v57  ;;  %v1846_v3 = vcombine.high %v1752_v58, %v1752_v58  ;;  %v1853_v4 = vrot.slane %v1752_v58, %v5594_v36 }
 0x100   : > { %v2336_v6 = vrot.slane %v2328_v61, %v5594_v36  ;;  %v1811_v8 = vcombine.high %v1809_v63, %v1809_v63  ;;  %v1750_v9 = vmax.f32 %v1659_v59, 0.0 }
 0x101   : > { %2891 = vst.msk [vmem:[#allocation2 + $0x8] sm:$0x1] %vm2890_vm7, %v4849_v1  ;;  %v2287_v11 = vcombine.low %v1802_v57, %v1810_v2  ;;  %v1860_v12 = vrot.slane %v1846_v3, %v5594_v36  ;;  %v1861_v13 = vcombine.high %v1853_v4, %v1853_v4  ;;  %v2329_v15 = vcombine.low %v1845_v0, %v1853_v4  ;;  %v4922_v16 = vpop.f32.mrf.mxu0 }
 0x102   : > { %v2288_v17 = vcombine.low %v1809_v63, %v1811_v8  ;;  %v1812_v18 = vcombine.high %v1750_v9, %v1750_v9  ;;  %v1819_v19 = vrot.slane %v1750_v9, %v5594_v36  ;;  %v1680_v20 = vadd.f32 %v4922_v16, %v5584_v31 }
 0x103   : > { %v2295_v21 = vrot.slane %v2287_v11, %v5594_v36  ;;  %v2343_v22 = vrot.slane %v2329_v15, %v5594_v36  ;;  %v5657_v23 = vcombine.low %v1861_v13, %v1860_v12  ;;  %v1671_v24 = vpop.f32.mrf.mxu0  ;;  %v1862_v25 = vcombine.high %v1860_v12, %v1860_v12 }
 0x104   : > { %v2302_v26 = vrot.slane %v2288_v17, %v5594_v36  ;;  %v1826_v28 = vrot.slane %v1812_v18, %v5594_v36  ;;  %v1827_v29 = vcombine.high %v1819_v19, %v1819_v19  ;;  %v1755_v7 = vmax.f32 %v1680_v20, 0.0 }
 0x105   : > { %v2344_v34 = vcombine.low %v2336_v6, %v2343_v22  ;;  %v2353_v35 = vrot.slane %v5657_v23, %v5594_v36  ;;  %v1672_v37 = vadd.f32 %v5584_v31, %v1671_v24  ;;  %v4923_v38 = vpop.f32.mrf.mxu0 }
 0x106   : > { %v2303_v42 = vcombine.low %v2295_v21, %v2302_v26  ;;  %v1828_v43 = vcombine.high %v1826_v28, %v1826_v28  ;;  %v2304_v44 = vcombine.low %v1819_v19, %v1827_v29  ;;  %v1897_v45 = vcombine.high %v1755_v7, %v1755_v7 }
 0x107   : > { %v2730_v46 = vsel %vm5664_vm0, %v2344_v34, 0.0  ;;  %v1904_v47 = vrot.slane %v1755_v7, %v5594_v36  ;;  %v1753_v48 = vmax.f32 %v1672_v37, 0.0  ;;  %v1683_v53 = vadd.f32 %v4923_v38, %v5584_v31  ;;  %v1674_v54 = vpop.f32.mrf.mxu0 }
 0x108   : > { %v2727_v55 = vsel %vm5673_vm1, %v2303_v42, 0.0  ;;  %v4850_v56 = vpack.c.bf16 %v2730_v46, %v2730_v46  ;;  %v2305_v57 = vcombine.low %v1826_v28, %v1828_v43  ;;  %v2312_v58 = vrot.slane %v2304_v44, %v5594_v36  ;;  %vm5790_vm1 = vmand %vm2195_vm12, %vm2205_vm13 }
 0x109   : > { %v4847_v59 = vpack.c.bf16 %v2727_v55, %v2727_v55  ;;  %v1911_v61 = vrot.slane %v1897_v45, %v5594_v36  ;;  %v1912_v62 = vcombine.high %v1904_v47, %v1904_v47  ;;  %v1863_v41 = vcombine.high %v1753_v48, %v1753_v48  ;;  %vm5880_vm13 = vmand %vm5790_vm1, %vm2221_vm8 }
 0x10a   : > { %2892 = vst.msk [vmem:[#allocation2 + $0xc] sm:$0xf] %vm2887_vm14, %v4850_v56  ;;  %v2319_v63 = vrot.slane %v2305_v57, %v5594_v36  ;;  %v1870_v1 = vrot.slane %v1753_v48, %v5594_v36  ;;  %v1756_v2 = vmax.f32 %v1683_v53, 0.0  ;;  %v1675_v3 = vadd.f32 %v5584_v31, %v1674_v54  ;;  %v4926_v4 = vpop.f32.mrf.mxu0 }
 0x10b   : > { %2888 = vst.msk [vmem:[#allocation2] sm:$0xf] %vm2887_vm14, %v4847_v59  ;;  %v5714_v6 = vcombine.low %v1904_v47, %v1912_v62  ;;  %v2409_v8 = vrot.slane %v1911_v61, %v5594_v36  ;;  %v1877_v9 = vrot.slane %v1863_v41, %v5594_v36  ;;  %v1913_v11 = vcombine.high %v1911_v61, %v1911_v61 }
 0x10c   : > { %v2320_v12 = vcombine.low %v2312_v58, %v2319_v63  ;;  %v1878_v13 = vcombine.high %v1870_v1, %v1870_v1  ;;  %v2346_v15 = vcombine.low %v1862_v25, %v1870_v1  ;;  %v1914_v16 = vcombine.high %v1756_v2, %v1756_v2  ;;  %v1687_v17 = vpop.f32.mrf.mxu0 }
 0x10d   : > { %v2401_v18 = vrot.slane %v5714_v6, %v5594_v36  ;;  %v2735_v19 = vsel %vm5707_vm10, %v2409_v8, 0.0  ;;  %v1879_v20 = vcombine.high %v1877_v9, %v1877_v9  ;;  %v1921_v21 = vrot.slane %v1756_v2, %v5594_v36 }
 0x10e   : > { %v2728_v22 = vsel %vm5596_vm5, %v2320_v12, 0.0  ;;  %v4855_v23 = vpack.c.bf16 %v2735_v19, %v2735_v19  ;;  %v2360_v24 = vrot.slane %v2346_v15, %v5594_v36  ;;  %v2368_v25 = vrot.slane %v1878_v13, %v5594_v36  ;;  %v4927_v26 = vpop.f32.mrf.mxu0  ;;  %vm5741_vm5 = vmand %vm2194_vm3, %vm2204_vm4 }
 0x10f   : > { %v4848_v27 = vpack.c.bf16 %v2728_v22, %v2728_v22  ;;  %v2369_v28 = vcombine.low %v1877_v9, %v1879_v20  ;;  %v1928_v29 = vrot.slane %v1914_v16, %v5594_v36  ;;  %v1929_v7 = vcombine.high %v1921_v21, %v1921_v21  ;;  %vm5757_vm0 = vmand %vm5741_vm5, %vm2221_vm8 }
 0x110   : > { %2897 = vst.msk [vmem:[#allocation2 + $0x20] sm:$0x1] %vm2890_vm7, %v4855_v23  ;;  %v2361_v33 = vcombine.low %v2353_v35, %v2360_v24  ;;  %v2732_v39 = vsel %vm2262_vm11, %v2368_v25, 0.0  ;;  %v2410_v34 = vcombine.low %v1913_v11, %v1921_v21  ;;  %v1754_v37 = vmax.f32 %v1675_v3, 0.0  ;;  %v1690_v38 = vpop.f32.mrf.mxu0  ;;  %vm5805_vm3 = vmand %vm5741_vm5, %vm2256_vm6 }
 0x111   : > { %2889 = vst.msk [vmem:[#allocation2 + $0x4] sm:$0xf] %vm2887_vm14, %v4848_v27  ;;  %v2377_v42 = vrot.slane %v2369_v28, %v5594_v36  ;;  %v4852_v43 = vpack.c.bf16 %v2732_v39, %v2732_v39  ;;  %v2411_v45 = vcombine.low %v1929_v7, %v1928_v29  ;;  %v1696_v35 = vadd.f32 %v4926_v4, %v5584_v31  ;;  %vm5819_vm4 = vmand %vm5790_vm1, %vm2256_vm6 }
 0x112   : > { %v2731_v46 = vsel %vm5649_vm15, %v2361_v33, 0.0  ;;  %v2418_v47 = vrot.slane %v2410_v34, %v5594_v36  ;;  %v1880_v48 = vcombine.high %v1754_v37, %v1754_v37  ;;  %v1887_v53 = vrot.slane %v1754_v37, %v5594_v36  ;;  %vm5779_vm15 = vmand %vm5692_vm9, %vm2221_vm8 }
 0x113   : > { %v4851_v54 = vpack.c.bf16 %v2731_v46, %v2731_v46  ;;  %2894 = vst.msk [vmem:[#allocation2 + $0x14] sm:$0x1] %vm2890_vm7, %v4852_v43  ;;  %v2425_v49 = vrot.slane %v2411_v45, %v5594_v36  ;;  %v1759_v55 = vmax.f32 %v1696_v35, 0.0  ;;  %v1688_v56 = vadd.f32 %v5584_v31, %v1687_v17 }
 0x114   : > { %v1894_v57 = vrot.slane %v1880_v48, %v5594_v36  ;;  %v1895_v58 = vcombine.high %v1887_v53, %v1887_v53  ;;  %v1930_v59 = vcombine.high %v1928_v29, %v1928_v29  ;;  %v1699_v61 = vadd.f32 %v4927_v26, %v5584_v31  ;;  %v5763_v62 = vpop.f32.mrf.mxu0 }
 0x115   : > { %2893 = vst.msk [vmem:[#allocation2 + $0x10] sm:$0xf] %vm2887_vm14, %v4851_v54  ;;  %v2426_v41 = vcombine.low %v2418_v47, %v2425_v49  ;;  %v1965_v63 = vcombine.high %v1759_v55, %v1759_v55  ;;  %v1972_v0 = vrot.slane %v1759_v55, %v5594_v36  ;;  %v1757_v1 = vmax.f32 %v1688_v56, 0.0 }
 0x116   : > { %v1896_v2 = vcombine.high %v1894_v57, %v1894_v57  ;;  %v2370_v3 = vcombine.low %v1887_v53, %v1895_v58  ;;  %v1760_v4 = vmax.f32 %v1699_v61, 0.0  ;;  %v1691_v8 = vadd.f32 %v5584_v31, %v1690_v38  ;;  %v5768_v9 = vpop.f32.mrf.mxu0 }
 0x117   : > { %v2736_v11 = vsel %vm5757_vm0, %v2426_v41, 0.0  ;;  %v1979_v12 = vrot.slane %v1965_v63, %v5594_v36  ;;  %v1980_v13 = vcombine.high %v1972_v0, %v1972_v0  ;;  %v1931_v15 = vcombine.high %v1757_v1, %v1757_v1 }
 0x118   : > { %v4856_v16 = vpack.c.bf16 %v2736_v11, %v2736_v11  ;;  %v2384_v17 = vrot.slane %v2370_v3, %v5594_v36  ;;  %v2386_v19 = vcombine.low %v1894_v57, %v1896_v2  ;;  %v1938_v20 = vrot.slane %v1757_v1, %v5594_v36  ;;  %v4931_v26 = vpop.f32.mrf.mxu0 }
 0x119   : > { %v1981_v22 = vcombine.high %v1979_v12, %v1979_v12  ;;  %v2468_v23 = vcombine.low %v1972_v0, %v1980_v13  ;;  %v1945_v24 = vrot.slane %v1931_v15, %v5594_v36  ;;  %v1982_v25 = vcombine.high %v1760_v4, %v1760_v4 }
 0x11a   : > { %2898 = vst.msk [vmem:[#allocation2 + $0x24] sm:$0xf] %vm2887_vm14, %v4856_v16  ;;  %v2385_v27 = vcombine.low %v2377_v42, %v2384_v17  ;;  %v2394_v28 = vrot.slane %v2386_v19, %v5594_v36  ;;  %v1946_v29 = vcombine.high %v1938_v20, %v1938_v20  ;;  %v2427_v7 = vcombine.low %v1930_v59, %v1938_v20  ;;  %v1706_v53 = vpop.f32.mrf.mxu0  ;;  %v5854_v16 = vld [vmem:[#allocation2 + $0xc] sm:$0xf] }
 0x11b   : > { %v2469_v39 = vcombine.low %v1979_v12, %v1981_v22  ;;  %v2476_v34 = vrot.slane %v2468_v23, %v5594_v36  ;;  %v1947_v37 = vcombine.high %v1945_v24, %v1945_v24  ;;  %v1989_v38 = vrot.slane %v1760_v4, %v5594_v36 }
 0x11c   : > { %v2402_v42 = vcombine.low %v2394_v28, %v2401_v18  ;;  %v2733_v43 = vsel %vm5779_vm15, %v2385_v27, 0.0  ;;  %v2428_v45 = vcombine.low %v1946_v29, %v1945_v24  ;;  %v2435_v35 = vrot.slane %v2427_v7, %v5594_v36 }
 0x11d   : > { %v4853_v46 = vpack.c.bf16 %v2733_v43, %v2733_v43  ;;  %v2483_v47 = vrot.slane %v2469_v39, %v5594_v36  ;;  %v2450_v6 = vrot.slane %v1947_v37, %v5594_v36  ;;  %v5813_v18 = vrot.slane %v1982_v25, %v5594_v36 }
 0x11e   : > { %v2734_v54 = vsel %vm5692_vm9, %v2402_v42, 0.0  ;;  %v2442_v49 = vrot.slane %v2428_v45, %v5594_v36  ;;  %v1997_v55 = vcombine.high %v1989_v38, %v1989_v38  ;;  %v2491_v56 = vrot.slane %v1989_v38, %v5594_v36  ;;  %v2920_v45 = vld [vmem:[#allocation2 + $0x4] sm:$0xf] }
 0x11f   : > { %vm2196_vm10 = vcmp.ge.s32.totalorder %v5623_v51, 1  ;;  %vm2206_vm11 = vcmp.le.s32.totalorder %v5623_v51, 16  ;;  %v4854_v14 = vpack.c.bf16 %v2734_v54, %v2734_v54  ;;  %2895 = vst.msk [vmem:[#allocation2 + $0x18] sm:$0xf] %vm2887_vm14, %v4853_v46  ;;  %v2484_v57 = vcombine.low %v2476_v34, %v2483_v47  ;;  %v5834_v30 = vpop.f32.mrf.mxu0 }
 0x120   : > { %v2738_v58 = vsel %vm5805_vm3, %v2450_v6, 0.0  ;;  %v1758_v59 = vmax.f32 %v1691_v8, 0.0  ;;  %vm2197_vm12 = vcmp.ge.s32.totalorder %v5626_v52, 1  ;;  %vm2207_vm9 = vcmp.le.s32.totalorder %v5626_v52, 16 }
 0x121   : > { %v2443_v61 = vcombine.low %v2435_v35, %v2442_v49  ;;  %v4858_v41 = vpack.c.bf16 %v2738_v58, %v2738_v58  ;;  %v5837_v63 = vcombine.low %v1997_v55, %v5813_v18  ;;  %v2741_v0 = vsel %vm5819_vm4, %v2491_v56, 0.0  ;;  %2896 = vst.msk [vmem:[#allocation2 + $0x1c] sm:$0xf] %vm2887_vm14, %v4854_v14  ;;  %v5845_v8 = vpop.f32.mrf.mxu0  ;;  %vm5907_vm0 = vmand %vm2197_vm12, %vm2207_vm9 }
 0x122   : > { %v2740_v1 = vsel %vm5790_vm1, %v2484_v57, 0.0  ;;  %v4861_v2 = vpack.c.bf16 %v2741_v0, %v2741_v0  ;;  %v1948_v3 = vcombine.high %v1758_v59, %v1758_v59  ;;  %v1955_v4 = vrot.slane %v1758_v59, %v5594_v36  ;;  %vm2277_vm15 = vmand %vm5907_vm0, %vm2256_vm6 }
 0x123   : > { %v2737_v11 = vsel %vm5741_vm5, %v2443_v61, 0.0  ;;  %2900 = vst.msk [vmem:[#allocation2 + $0x2c] sm:$0x1] %vm2890_vm7, %v4858_v41  ;;  %v2500_v12 = vrot.slane %v5837_v63, %v5594_v36  ;;  %v4860_v13 = vpack.c.bf16 %v2740_v1, %v2740_v1  ;;  %v1712_v15 = vadd.f32 %v5763_v62, %v5584_v31  ;;  %v5860_v21 = vpop.f32.mrf.mxu0  ;;  %vm5892_vm5 = vmand %vm2196_vm10, %vm2206_vm11 }
 0x124   : > { %v4857_v17 = vpack.c.bf16 %v2737_v11, %v2737_v11  ;;  %2903 = vst.msk [vmem:[#allocation2 + $0x38] sm:$0x1] %vm2890_vm7, %v4861_v2  ;;  %v1962_v19 = vrot.slane %v1948_v3, %v5594_v36  ;;  %v1963_v20 = vcombine.high %v1955_v4, %v1955_v4  ;;  %v1704_v44 = vadd.f32 %v5584_v31, %v5768_v9  ;;  %vm2239_vm1 = vmand %vm5892_vm5, %vm2221_vm8 }
 0x125   : > { %2902 = vst.msk [vmem:[#allocation2 + $0x34] sm:$0xf] %vm2887_vm14, %v4860_v13  ;;  %v1763_v22 = vmax.f32 %v1712_v15, 0.0  ;;  %v1998_v23 = vcombine.high %v5813_v18, %v5813_v18  ;;  %v1715_v62 = vadd.f32 %v4931_v26, %v5584_v31  ;;  %v1707_v24 = vadd.f32 %v5584_v31, %v1706_v53  ;;  %v5869_v9 = vpop.f32.mrf.mxu0  ;;  %vm5949_vm11 = vmand %vm5892_vm5, %vm2256_vm6 }
 0x126   : > { %2899 = vst.msk [vmem:[#allocation2 + $0x28] sm:$0xf] %vm2887_vm14, %v4857_v17  ;;  %v1964_v25 = vcombine.high %v1962_v19, %v1962_v19  ;;  %v2451_v27 = vcombine.low %v1955_v4, %v1963_v20  ;;  %v1761_v28 = vmax.f32 %v1704_v44, 0.0  ;;  %v3021_v29 = vshrl.u32 %v5854_v16, 16  ;;  %v5929_v44 = vld [vmem:[#allocation2 + $0x10] sm:$0xf]  ;;  %vm5970_vm12 = vmand %vm5907_vm0, %vm2221_vm8 }
 0x127   : > { %v2033_v7 = vcombine.high %v1763_v22, %v1763_v22  ;;  %v2040_v39 = vrot.slane %v1763_v22, %v5594_v36  ;;  %v1764_v34 = vmax.f32 %v1715_v62, 0.0  ;;  %v1762_v37 = vmax.f32 %v1707_v24, 0.0  ;;  %v5874_v50 = vpop.f32.mrf.mxu0 }
 0x128   : > { %v2452_v38 = vcombine.low %v1962_v19, %v1964_v25  ;;  %v2459_v42 = vrot.slane %v2451_v27, %v5594_v36  ;;  %v1999_v26 = vcombine.high %v1761_v28, %v1761_v28  ;;  %v2006_v43 = vrot.slane %v1761_v28, %v5594_v36 }
 0x129   : > { %v2047_v35 = vrot.slane %v2033_v7, %v5594_v36  ;;  %v2048_v46 = vcombine.high %v2040_v39, %v2040_v39  ;;  %v2050_v47 = vcombine.high %v1764_v34, %v1764_v34  ;;  %v2057_v6 = vrot.slane %v1764_v34, %v5594_v36  ;;  %v5896_v49 = vpop.f32.mrf.mxu0 }
 0x12a   : > { %v2466_v18 = vrot.slane %v2452_v38, %v5594_v36  ;;  %v2013_v48 = vrot.slane %v1999_v26, %v5594_v36  ;;  %v2014_v53 = vcombine.high %v2006_v43, %v2006_v43  ;;  %v2493_v54 = vcombine.low %v1998_v23, %v2006_v43 }
 0x12b   : > { %v2049_v55 = vcombine.high %v2047_v35, %v2047_v35  ;;  %v5898_v56 = vcombine.low %v2040_v39, %v2048_v46  ;;  %v5901_v14 = vrot.slane %v2050_v47, %v5594_v36  ;;  %v2065_v57 = vcombine.high %v2057_v6, %v2057_v6  ;;  %v4939_v63 = vpop.f32.mrf.mxu0 }
 0x12c   : > { %v2467_v58 = vcombine.low %v2459_v42, %v2466_v18  ;;  %v2507_v59 = vrot.slane %v2493_v54, %v5594_v36  ;;  %v2509_v61 = vcombine.low %v2014_v53, %v2013_v48  ;;  %v2015_v41 = vcombine.high %v2013_v48, %v2013_v48  ;;  %v5940_v42 = vld [vmem:[#allocation2 + $0x8] ss:$0 sps:$4 sm:$0x11]   ;;  %v2943_v18 = vld [vmem:[#allocation2] sm:$0xe] }
 0x12d   : > { %v2548_v0 = vrot.slane %v5898_v56, %v5594_v36  ;;  %v2550_v1 = vcombine.low %v2047_v35, %v2049_v55  ;;  %v2551_v52 = vcombine.low %v2057_v6, %v2065_v57  ;;  %v2573_v2 = vrot.slane %v5901_v14, %v5594_v36  ;;  %v2968_v57 = vld [vmem:[#allocation2 + $0x14] sm:$0x1]  ;;  %v2919_v63 = vld [vmem:[#allocation2] sm:$0xf] }
 0x12e   : > { %v2739_v3 = vsel %vm5880_vm13, %v2467_v58, 0.0  ;;  %v2508_v4 = vcombine.low %v2500_v12, %v2507_v59  ;;  %v2517_v11 = vrot.slane %v2509_v61, %v5594_v36  ;;  %v2016_v13 = vcombine.high %v1762_v37, %v1762_v37 }
 0x12f   : > { %v4859_v15 = vpack.c.bf16 %v2739_v3, %v2739_v3  ;;  %v2558_v17 = vrot.slane %v2550_v1, %v5594_v36  ;;  %v2565_v19 = vrot.slane %v2551_v52, %v5594_v36  ;;  %v2747_v20 = vsel %vm2277_vm15, %v2573_v2, 0.0  ;;  %v2922_v1 = vld [vmem:[#allocation2 + $0x10] sm:$0xf] }
 0x130   : > { %vm3604_vm3 = vcmask 1046528   ;;  %vm3017_vm4 = vsmask.f32 3328  ;;  %vm3018_vm10 = vsmask.f32 7440  ;;  %v2742_v22 = vsel %vm2239_vm1, %v2508_v4, 0.0 }
 0x131   : > { %v4867_v23 = vpack.c.bf16 %v2747_v20, %v2747_v20  ;;  %v2023_v62 = vrot.slane %v1762_v37, %v5594_v36  ;;  %v2030_v12 = vrot.slane %v2016_v13, %v5594_v36  ;;  %2901 = vst.msk [vmem:[#allocation2 + $0x30] sm:$0xf] %vm2887_vm14, %v4859_v15  ;;  %v4862_v24 = vpack.c.bf16 %v2742_v22, %v2742_v22  ;;  %v5979_v13 = vld [vmem:[#allocation2 + $0x14] ss:$0 sps:$4 sm:$0x11]  }
 0x132   : > { %v2566_v25 = vcombine.low %v2558_v17, %v2565_v19  ;;  %v3023_v27 = vrot.slane %v3021_v29, 4  ;;  %v3024_v28 = vshll.u32 %v5854_v16, 16  ;;  %v5938_v38 = vcombine.low %v5854_v16, %v5929_v44  ;;  %v2976_v19 = vld [vmem:[#allocation2 + $0xc] sm:$0xe] }
 0x133   : > { %2909 = vst.msk [vmem:[#allocation2 + $0x50] sm:$0x1] %vm2890_vm7, %v4867_v23  ;;  %v2031_v7 = vcombine.high %v2023_v62, %v2023_v62  ;;  %v2032_v39 = vcombine.high %v2030_v12, %v2030_v12  ;;  %v2510_v34 = vcombine.low %v2015_v41, %v2023_v62  ;;  %v3030_v43 = vshll.u32 %v5929_v44, 16  ;;  %v2921_v22 = vld [vmem:[#allocation2 + $0xc] sm:$0xf] }
 0x134   : > { %2904 = vst.msk [vmem:[#allocation2 + $0x3c] sm:$0xf] %vm2887_vm14, %v4862_v24  ;;  %v2746_v37 = vsel %vm5907_vm0, %v2566_v25, 0.0  ;;  %v3026_v26 = vrot.slane %v3024_v28, 5  ;;  %v3034_v16 = vshrl.u32 %v5929_v44, 16  ;;  %3685 = vrot.lane.b32.xlu0 %v5938_v38, %s6938_s17  ;;  %v3728_v55 = vshll.u32 %v5938_v38, 16 }
 0x135   : > { %v4866_v35 = vpack.c.bf16 %v2746_v37, %v2746_v37  ;;  %v2524_v46 = vrot.slane %v2510_v34, %v5594_v36  ;;  %v2532_v47 = vrot.slane %v2031_v7, %v5594_v36  ;;  %v2533_v6 = vcombine.low %v2030_v12, %v2032_v39  ;;  %v2944_v24 = vld [vmem:[#allocation2 + $0xc] sm:$0xe] }
 0x136   : > { %v3027_v48 = vor.u32 %v3026_v26, %v3023_v27  ;;  %v5959_v53 = vrot.slane %v3030_v43, 5  ;;  %v3036_v54 = vrot.slane %v3034_v16, 4  ;;  %v4764_v41 = vcombine.low %v2943_v18, %v2920_v45 }
 0x137   : > { %2908 = vst.msk [vmem:[#allocation2 + $0x4c] sm:$0xf] %vm2887_vm14, %v4866_v35  ;;  %v2525_v58 = vcombine.low %v2517_v11, %v2524_v46  ;;  %v2541_v59 = vrot.slane %v2533_v6, %v5594_v36  ;;  %v2744_v61 = vsel %vm5949_vm11, %v2532_v47, 0.0  ;;  %v3606_v4 = vrot.slane %v5940_v42, 1  ;;  %v6017_v6 = vld [vmem:[#allocation2 + $0x20] sm:$0x1] }
 0x138   : > { %v4864_v2 = vpack.c.bf16 %v2744_v61, %v2744_v61  ;;  %v5974_v3 = vrot.slane %v3027_v48, 4  ;;  %v5977_v11 = vcombine.low %v2919_v63, %v2920_v45  ;;  %vm3467_vm9 = vsmask.f32 7424  ;;  %v6008_v45 = vld [vmem:[#allocation2 + $0x1c] sm:$0xf] }
 0x139   : > { %v2549_v15 = vcombine.low %v2541_v59, %v2548_v0  ;;  %v2743_v51 = vsel %vm5892_vm5, %v2525_v58, 0.0  ;;  %v3605_v17 = vrot.slane %v4764_v41, 1  ;;  %v5986_v20 = vcombine.low %v2968_v57, %v2968_v57  ;;  %vm5998_vm5 = vmor %vm3017_vm4, %vm3018_vm10 }
 0x13a   : > { %v4863_v23 = vpack.c.bf16 %v2743_v51, %v2743_v51  ;;  %2906 = vst.msk [vmem:[#allocation2 + $0x44] sm:$0x1] %vm2890_vm7, %v4864_v2  ;;  %v4788_v62 = vcombine.low %v2976_v19, %v5929_v44  ;;  %v3040_v12 = vshll.u32 %v2968_v57, 16  ;;  %v5990_v25 = vcombine.low %v2921_v22, %v2922_v1  ;;  %v2954_v44 = vld [vmem:[#allocation2 + $0x18] sm:$0xf] }
 0x13b   : > { %vm3244_vm13 = vcmask 64512   ;;  %v2745_v56 = vsel %vm5970_vm12, %v2549_v15, 0.0  ;;  %v3607_v33 = vsel %vm3604_vm3, %v3605_v17, %v3606_v4  ;;  %v3862_v0 = vrot.slane %v5986_v20, 1 }
 0x13c   : > { %v4765_v27 = vcombine.low %v2944_v24, %v2922_v1  ;;  %v4865_v7 = vpack.c.bf16 %v2745_v56, %v2745_v56  ;;  %2905 = vst.msk [vmem:[#allocation2 + $0x40] sm:$0xf] %vm2887_vm14, %v4863_v23  ;;  %3629 = vrot.lane.b32.xlu1 %v3607_v33, %s5270_s20  ;;  %v3861_v39 = vrot.slane %v4788_v62, 1  ;;  %v3042_v34 = vrot.slane %v3040_v12, 5  ;;  %v6034_v23 = vld [vmem:[#allocation2 + $0x28] sm:$0xf] }
 0x13d   : > { %v3609_v37 = vrot.slane %v5979_v13, 1  ;;  %v3469_v26 = vshrl.u32 %v5977_v11, 16  ;;  %v3471_v43 = vshll.u32 %v5977_v11, 16  ;;  %v3476_v16 = vshll.u32 %v5940_v42, 16 }
 0x13e   : > { %v3608_v29 = vrot.slane %v4765_v27, 1  ;;  %2907 = vst.msk [vmem:[#allocation2 + $0x48] sm:$0xf] %vm2887_vm14, %v4865_v7  ;;  %v3863_v35 = vsel %vm3604_vm3, %v3861_v39, %v3862_v0  ;;  %v3033_v46 = vsel %vm5998_vm5, %v5974_v3, %v5959_v53  ;;  %v3037_v47 = vor.u32 %v3036_v54, %v5959_v53  ;;  %v2987_v7 = vld [vmem:[#allocation2 + $0x24] sm:$0xf] }
 0x13f   : > { %v3045_v18 = vshrl.u32 %v2954_v44, 16  ;;  %3885 = vrot.lane.b32.xlu0 %v3863_v35, %s5271_s21  ;;  %v3473_v48 = vrot.slane %v3471_v43, 1  ;;  %v3478_v57 = vrot.slane %v3476_v16, 1  ;;  %v3048_v58 = vshll.u32 %v2954_v44, 16  ;;  %v6049_v39 = vld [vmem:[#allocation2 + $0x24] sm:$0xe] }
 0x140   : > { %v3610_v42 = vsel %vm3604_vm3, %v3608_v29, %v3609_v37  ;;  %v3038_v59 = vrot.slane %v3037_v47, 4  ;;  %v3054_v41 = vshll.u32 %v6008_v45, 16  ;;  %v3058_v63 = vshrl.u32 %v6008_v45, 16 }
 0x141   : > { %3631 = vrot.lane.b32.xlu1 %v3610_v42, %s5270_s20  ;;  %v3047_v61 = vrot.slane %v3045_v18, 4  ;;  %v3474_v53 = vor.u32 %v3473_v48, %v3469_v26  ;;  %v3050_v54 = vrot.slane %v3048_v58, 5  ;;  %v3064_v1 = vshll.u32 %v6017_v6, 16 }
 0x142   : > { %v6026_v52 = vcombine.low %v2954_v44, %v6008_v45  ;;  %v3043_v2 = vsel %vm5998_vm5, %v3038_v59, %v3042_v34  ;;  %v3056_v3 = vrot.slane %v3054_v41, 5  ;;  %v3060_v4 = vrot.slane %v3058_v63, 4 }
 0x143   : > { %v3481_v15 = vshrl.u32 %v5990_v25, 16  ;;  %v3479_v51 = vsel %vm3467_vm9, %v3474_v53, %v3478_v57  ;;  %v4732_v17 = vcombine.low %v3033_v46, %v3043_v2  ;;  %v3051_v19 = vor.u32 %v3050_v54, %v3047_v61 }
 0x144   : > { %v3066_v22 = vrot.slane %v3064_v1, 5  ;;  %vm2198_vm0 = vcmp.ge.s32.totalorder %v5635_v60, 1  ;;  %vm2208_vm15 = vcmp.le.s32.totalorder %v5635_v60, 16  ;;  %3564 = vrot.lane.b32.xlu0 %v3479_v51, %s6942_s22  ;;  %v3061_v62 = vor.u32 %v3060_v4, %v3056_v3  ;;  %v6078_v51 = vld [vmem:[#allocation2 + $0x24] sm:$0xf] }
 0x145   : > { %v3740_v12 = vshll.u32 %v6026_v52, 16  ;;  %3687 = vrot.lane.b32.xlu1 %v6026_v52, %s6938_s17  ;;  %v3483_v24 = vshll.u32 %v5990_v25, 16  ;;  %v3488_v56 = vshll.u32 %v5979_v13, 16  ;;  %4942 = vmatprep.mubr.msk.bf16.mxu0 %vm3244_vm13, %v4732_v17  ;;  %v3052_v33 = vrot.slane %v3051_v19, 4  ;;  %vm6084_vm1 = vmand %vm2198_vm0, %vm2208_vm15  ;;  %v2931_v28 = vld [vmem:[#allocation2 + $0x48] sm:$0xf] }
 0x146   : > { %v1728_v0 = vadd.f32 %v5834_v30, %v5584_v31  ;;  %v1720_v27 = vadd.f32 %v5584_v31, %v5845_v8  ;;  %v2066_v44 = vcombine.high %v5901_v14, %v5901_v14  ;;  %v3062_v34 = vrot.slane %v3061_v62, 4  ;;  %vm2245_vm4 = vmand %vm6084_vm1, %vm2221_vm8 }
 0x147   : > { %v3485_v37 = vrot.slane %v3483_v24, 1  ;;  %v3490_v29 = vrot.slane %v3488_v56, 1  ;;  %v6052_v13 = vcombine.low %v2987_v7, %v6034_v23  ;;  %v3057_v26 = vsel %vm5998_vm5, %v3052_v33, %v3056_v3  ;;  %v6090_v24 = vld [vmem:[#allocation2 + $0x28] sm:$0xf]  ;;  %vm6119_vm10 = vmand %vm6084_vm1, %vm2256_vm6 }
 0x148   : > { %v1767_v43 = vmax.f32 %v1728_v0, 0.0  ;;  %v1765_v30 = vmax.f32 %v1720_v27, 0.0  ;;  %v4813_v8 = vcombine.low %v6049_v39, %v6034_v23  ;;  %v3067_v14 = vsel %vm5998_vm5, %v3062_v34, %v3066_v22 }
 0x149   : > { %v3486_v16 = vor.u32 %v3485_v37, %v3481_v15  ;;  %v3996_v35 = vshll.u32 %v6052_v13, 16  ;;  %3943 = vrot.lane.b32.xlu1 %v6052_v13, %s6940_s24  ;;  %v3726_v46 = vshrl.u32 %v5938_v38, 16  ;;  %v4733_v47 = vcombine.low %v3057_v26, %v3067_v14 }
 0x14a   : > { %v2101_v18 = vcombine.high %v1767_v43, %v1767_v43  ;;  %v2108_v42 = vrot.slane %v1767_v43, %v5594_v36  ;;  %v2067_v48 = vcombine.high %v1765_v30, %v1765_v30  ;;  %v2074_v58 = vrot.slane %v1765_v30, %v5594_v36 }
 0x14b   : > { %v3491_v57 = vsel %vm3467_vm9, %v3486_v16, %v3490_v29  ;;  %v3730_v59 = vrot.slane %v3728_v55, 1  ;;  %v3733_v61 = vshll.u32 %v5986_v20, 16  ;;  %v1731_v54 = vadd.f32 %v5860_v21, %v5584_v31  ;;  %4943 = vmatmul.mubr.msk.bf16.vlgmr.msra.gmra.mxu0 %vm3244_vm13, %v4733_v47 }
 0x14c   : > { %3566 = vrot.lane.b32.xlu0 %v3491_v57, %s6942_s22  ;;  %v2115_v41 = vrot.slane %v2101_v18, %v5594_v36  ;;  %v2116_v63 = vcombine.high %v2108_v42, %v2108_v42  ;;  %v2081_v53 = vrot.slane %v2067_v48, %v5594_v36  ;;  %v2082_v1 = vcombine.high %v2074_v58, %v2074_v58 }
 0x14d   : > { %v2574_v2 = vcombine.low %v2066_v44, %v2074_v58  ;;  %v3731_v3 = vor.u32 %v3730_v59, %v3726_v46  ;;  %v3735_v4 = vrot.slane %v3733_v61, 1  ;;  %v1768_v15 = vmax.f32 %v1731_v54, 0.0  ;;  %v6109_v59 = vld [vmem:[#allocation2 + $0x2c] sm:$0x1] }
 0x14e   : > { %v2117_v38 = vcombine.high %v2115_v41, %v2115_v41  ;;  %v2615_v55 = vcombine.low %v2108_v42, %v2116_v63  ;;  %v1723_v20 = vadd.f32 %v5584_v31, %v5869_v9  ;;  %v2575_v17 = vcombine.low %v2082_v1, %v2081_v53 }
 0x14f   : > { %v2582_v19 = vrot.slane %v2574_v2, %v5594_v36  ;;  %v3736_v22 = vsel %vm3467_vm9, %v3731_v3, %v3735_v4  ;;  %v2083_v62 = vcombine.high %v2081_v53, %v2081_v53  ;;  %v2118_v9 = vcombine.high %v1768_v15, %v1768_v15 }
 0x150   : > { %v2616_v56 = vcombine.low %v2115_v41, %v2117_v38  ;;  %v2623_v31 = vrot.slane %v2615_v55, %v5594_v36  ;;  %3821 = vrot.lane.b32.xlu0 %v3736_v22, %s5274_s25  ;;  %v2125_v60 = vrot.slane %v1768_v15, %v5594_v36  ;;  %v2589_v33 = vrot.slane %v2575_v17, %v5594_v36  ;;  %v2977_v17 = vld [vmem:[#allocation2 + $0x18] sm:$0xe] }
 0x151   : > { %v1766_v0 = vmax.f32 %v1723_v20, 0.0  ;;  %v3069_v27 = vshrl.u32 %v6078_v51, 16  ;;  %v3072_v44 = vshll.u32 %v6078_v51, 16  ;;  %v2132_v34 = vrot.slane %v2118_v9, %v5594_v36  ;;  %v6132_v9 = vld [vmem:[#allocation2 + $0x2c] ss:$0 sps:$4 sm:$0x11]  }
 0x152   : > { %v2630_v7 = vrot.slane %v2616_v56, %v5594_v36  ;;  %v2133_v37 = vcombine.high %v2125_v60, %v2125_v60  ;;  %v3078_v29 = vshll.u32 %v6090_v24, 16  ;;  %v2590_v26 = vcombine.low %v2582_v19, %v2589_v33 }
 0x153   : > { %v2084_v43 = vcombine.high %v1766_v0, %v1766_v0  ;;  %v2091_v30 = vrot.slane %v1766_v0, %v5594_v36  ;;  %v3071_v14 = vrot.slane %v3069_v27, 4  ;;  %v2134_v46 = vcombine.high %v2132_v34, %v2132_v34 }
 0x154   : > { %v6106_v16 = vcombine.low %v2623_v31, %v2630_v7  ;;  %v2632_v47 = vcombine.low %v2125_v60, %v2133_v37  ;;  %v3074_v18 = vrot.slane %v3072_v44, 5  ;;  %v2748_v42 = vsel %vm2245_vm4, %v2590_v26, 0.0  ;;  %v2986_v31 = vld [vmem:[#allocation2 + $0x1c] sm:$0xf]  ;;  %v2985_v44 = vld [vmem:[#allocation2 + $0x18] sm:$0xf] }
 0x155   : > { %v2098_v48 = vrot.slane %v2084_v43, %v5594_v36  ;;  %v2099_v57 = vcombine.high %v2091_v30, %v2091_v30  ;;  %v2591_v58 = vcombine.low %v2083_v62, %v2091_v30  ;;  %v4868_v61 = vpack.c.bf16 %v2748_v42, %v2748_v42  ;;  %v2925_v7 = vld [vmem:[#allocation2 + $0x24] sm:$0xf]  ;;  %v3009_v26 = vld [vmem:[#allocation2 + $0x18] sm:$0xe]  ;;  %v6148_v42 = vld [vmem:[%s6934_s5 + $0x20] ss:$0 sps:$4 sm:$0xff]  }
 0x156   : > { %v2633_v41 = vcombine.low %v2132_v34, %v2134_v46  ;;  %v2640_v63 = vrot.slane %v2632_v47, %v5594_v36  ;;  %v3075_v53 = vor.u32 %v3074_v18, %v3071_v14  ;;  %v3080_v3 = vrot.slane %v3078_v29, 5  ;;  %v2926_v34 = vld [vmem:[#allocation2 + $0x28] sm:$0xf]  ;;  %v2946_v47 = vld [vmem:[#allocation2 + $0x24] sm:$0xe]  ;;  %4989 = vmatprep.subr.msk.bf16.mxu1 %vm3269_vm2, %v6148_v42 }
 0x157   : > { %v2100_v54 = vcombine.high %v2098_v48, %v2098_v48  ;;  %v2592_v1 = vcombine.low %v2099_v57, %v2098_v48  ;;  %v2599_v2 = vrot.slane %v2591_v58, %v5594_v36  ;;  %2910 = vst.msk [vmem:[#allocation2 + $0x54] sm:$0xf] %vm2887_vm14, %v4868_v61  ;;  %v3082_v15 = vshrl.u32 %v6090_v24, 16  ;;  %v6143_v18 = vld [vmem:[#allocation2 + $0x30] sm:$0xf] }
 0x158   : > { %v2647_v4 = vrot.slane %v2633_v41, %v5594_v36  ;;  %v3076_v55 = vrot.slane %v3075_v53, 4  ;;  %v3088_v20 = vshll.u32 %v6109_v59, 16  ;;  %v6129_v62 = vcombine.low %v6017_v6, %v6017_v6  ;;  %v6155_v41 = vld [vmem:[#allocation2 + $0x34] sm:$0xf] }
 0x159   : > { %v2606_v19 = vrot.slane %v2592_v1, %v5594_v36  ;;  %v2614_v22 = vrot.slane %v2100_v54, %v5594_v36  ;;  %v4789_v56 = vcombine.low %v2977_v17, %v6008_v45  ;;  %v3084_v0 = vrot.slane %v3082_v15, 4 }
 0x15a   : > { %v6134_v60 = vcombine.low %v2640_v63, %v2647_v4  ;;  %v3081_v33 = vsel %vm5998_vm5, %v3076_v55, %v3080_v3  ;;  %v3090_v27 = vrot.slane %v3088_v20, 5  ;;  %v3865_v45 = vrot.slane %v6129_v62, 1  ;;  %v6157_v63 = vld [vmem:[#allocation2 + $0x38] sm:$0x1] }
 0x15b   : > { %v2607_v37 = vcombine.low %v2599_v2, %v2606_v19  ;;  %v2750_v6 = vsel %vm6119_vm10, %v2614_v22, 0.0  ;;  %v3864_v29 = vrot.slane %v4789_v56, 1  ;;  %v3085_v30 = vor.u32 %v3084_v0, %v3080_v3  ;;  %v6183_v0 = vld [vmem:[#allocation2 + $0x3c] sm:$0xf] }
 0x15c   : > { %v4870_v43 = vpack.c.bf16 %v2750_v6, %v2750_v6  ;;  %v6141_v14 = vcombine.low %v2985_v44, %v2986_v31  ;;  %v4812_v46 = vcombine.low %v3009_v26, %v2986_v31  ;;  %v6153_v58 = vcombine.low %v2925_v7, %v2926_v34 }
 0x15d   : > { %v2749_v48 = vsel %vm6084_vm1, %v2607_v37, 0.0  ;;  %v3866_v57 = vsel %vm3604_vm3, %v3864_v29, %v3865_v45  ;;  %v4767_v61 = vcombine.low %v2946_v47, %v2926_v34  ;;  %v3086_v54 = vrot.slane %v3085_v30, 4  ;;  %v6188_v37 = vld [vmem:[#allocation2 + $0x40] sm:$0xf] }
 0x15e   : > { %v4869_v53 = vpack.c.bf16 %v2749_v48, %v2749_v48  ;;  %2912 = vst.msk [vmem:[#allocation2 + $0x5c] sm:$0x1] %vm2890_vm7, %v4870_v43  ;;  %3887 = vrot.lane.b32.xlu1 %v3866_v57, %s5271_s21  ;;  %v3984_v1 = vshll.u32 %v6141_v14, 16  ;;  %3941 = vrot.lane.b32.xlu0 %v6141_v14, %s6940_s24  ;;  %v3615_v21 = vrot.slane %v6132_v9, 1  ;;  %v6167_v3 = vcombine.low %v6078_v51, %v6090_v24 }
 0x15f   : > { %v3614_v2 = vrot.slane %v4767_v61, 1  ;;  %v3093_v4 = vshrl.u32 %v6143_v18, 16  ;;  %v3096_v38 = vshll.u32 %v6143_v18, 16  ;;  %v3091_v55 = vsel %vm5998_vm5, %v3086_v54, %v3090_v27  ;;  %v6179_v51 = vld [vmem:[#allocation2 + $0x20] ss:$0 sps:$4 sm:$0x11]  }
 0x160   : > { %2911 = vst.msk [vmem:[#allocation2 + $0x58] sm:$0xf] %vm2887_vm14, %v4869_v53  ;;  %v3102_v15 = vshll.u32 %v6155_v41, 16  ;;  %v3106_v20 = vshrl.u32 %v6155_v41, 16  ;;  %v3112_v17 = vshll.u32 %v6157_v63, 16  ;;  %v4734_v19 = vcombine.low %v3081_v33, %v3091_v55 }
 0x161   : > { %v3616_v22 = vsel %vm3604_vm3, %v3614_v2, %v3615_v21  ;;  %v3752_v56 = vshll.u32 %v6167_v3, 16  ;;  %v3095_v31 = vrot.slane %v3093_v4, 4  ;;  %v3098_v27 = vrot.slane %v3096_v38, 5  ;;  %v5098_v48 = vld [vmem:[#allocation2 + $0x20] ss:$0 sps:$4 sm:$0x11]  }
 0x162   : > { %3635 = vrot.lane.b32.xlu1 %v3616_v22, %s5270_s20  ;;  %3689 = vrot.lane.b32.xlu0 %v6167_v3, %s6938_s17  ;;  %v3104_v44 = vrot.slane %v3102_v15, 5  ;;  %v3108_v7 = vrot.slane %v3106_v20, 4  ;;  %v3114_v34 = vrot.slane %v3112_v17, 5  ;;  %v3738_v33 = vshrl.u32 %v6026_v52, 16  ;;  %v2923_v21 = vld [vmem:[#allocation2 + $0x18] sm:$0xf] }
 0x163   : > { %4946 = vmatprep.mubr.msk.bf16.mxu1 %vm3244_vm13, %v4734_v19  ;;  %v3742_v6 = vrot.slane %v3740_v12, 1  ;;  %v3745_v29 = vshll.u32 %v6129_v62, 16  ;;  %v4117_v45 = vrot.slane %v4812_v46, 1  ;;  %v3099_v26 = vor.u32 %v3098_v27, %v3095_v31  ;;  %v2924_v2 = vld [vmem:[#allocation2 + $0x1c] sm:$0xf] }
 0x164   : > { %v3109_v43 = vor.u32 %v3108_v7, %v3104_v44  ;;  %v4118_v30 = vrot.slane %v6179_v51, 1  ;;  %v3117_v47 = vshrl.u32 %v6183_v0, 16  ;;  %v3120_v53 = vshll.u32 %v6183_v0, 16  ;;  %v6202_v38 = vld [vmem:[#allocation2 + $0x44] sm:$0x1] }
 0x165   : > { %v3743_v57 = vor.u32 %v3742_v6, %v3738_v33  ;;  %v3747_v61 = vrot.slane %v3745_v29, 1  ;;  %v3126_v54 = vshll.u32 %v6188_v37, 16  ;;  %v3100_v52 = vrot.slane %v3099_v26, 4  ;;  %v2945_v27 = vld [vmem:[#allocation2 + $0x18] sm:$0xe] }
 0x166   : > { %v3110_v12 = vrot.slane %v3109_v43, 4  ;;  %v4119_v62 = vsel %vm3604_vm3, %v4117_v45, %v4118_v30  ;;  %v3119_v46 = vrot.slane %v3117_v47, 4  ;;  %v3122_v55 = vrot.slane %v3120_v53, 5  ;;  %v5101_v45 = vld [vmem:[#allocation2 + $0x2c] ss:$0 sps:$4 sm:$0x11]  }
 0x167   : > { %v3748_v4 = vsel %vm3467_vm9, %v3743_v57, %v3747_v61  ;;  %4141 = vrot.lane.b32.xlu0 %v4119_v62, %s5275_s14  ;;  %v3128_v15 = vrot.slane %v3126_v54, 5  ;;  %v3130_v20 = vshrl.u32 %v6188_v37, 16  ;;  %v3105_v17 = vsel %vm5998_vm5, %v3100_v52, %v3104_v44 }
 0x168   : > { %v3115_v19 = vsel %vm5998_vm5, %v3110_v12, %v3114_v34  ;;  %3823 = vrot.lane.b32.xlu1 %v3748_v4, %s5274_s25  ;;  %v3136_v22 = vshll.u32 %v6202_v38, 16  ;;  %v6211_v31 = vcombine.low %v2923_v21, %v2924_v2  ;;  %v3123_v33 = vor.u32 %v3122_v55, %v3119_v46 }
 0x169   : > { %v4735_v7 = vcombine.low %v3105_v17, %v3115_v19  ;;  %v3132_v6 = vrot.slane %v3130_v20, 4  ;;  %v3500_v29 = vshll.u32 %v5098_v48, 16  ;;  %v4766_v30 = vcombine.low %v2945_v27, %v2924_v2  ;;  %v2978_v20 = vld [vmem:[#allocation2 + $0x24] sm:$0xe]  ;;  %v6230_v17 = vld [vmem:[#allocation2 + $0x48] sm:$0xf] }
 0x16a   : > { %v3138_v26 = vrot.slane %v3136_v22, 5  ;;  %v3493_v43 = vshrl.u32 %v6211_v31, 16  ;;  %v3495_v44 = vshll.u32 %v6211_v31, 16  ;;  %v3124_v34 = vrot.slane %v3123_v33, 4 }
 0x16b   : > { %4947 = vmatmul.mubr.msk.bf16.vlgmr.msra.gmra.mxu1 %vm3244_vm13, %v4735_v7  ;;  %v3133_v47 = vor.u32 %v3132_v6, %v3128_v15  ;;  %v3502_v57 = vrot.slane %v3500_v29, 1  ;;  %v3612_v61 = vrot.slane %v5098_v48, 1  ;;  %v3611_v54 = vrot.slane %v4766_v30, 1 }
 0x16c   : > { %v3497_v53 = vrot.slane %v3495_v44, 1  ;;  %v6218_v21 = vcombine.low %v6143_v18, %v6155_v41  ;;  %v4120_v52 = vrot.slane %v4813_v8, 1  ;;  %v3129_v12 = vsel %vm5998_vm5, %v3124_v34, %v3128_v15 }
 0x16d   : > { %v3134_v2 = vrot.slane %v3133_v47, 4  ;;  %v4121_v62 = vrot.slane %v5101_v45, 1  ;;  %v3994_v46 = vshrl.u32 %v6052_v13, 16  ;;  %v3613_v48 = vsel %vm3604_vm3, %v3611_v54, %v3612_v61  ;;  %v6242_v13 = vld [vmem:[#allocation2 + $0x4c] sm:$0xf] }
 0x16e   : > { %v3498_v4 = vor.u32 %v3497_v53, %v3493_v43  ;;  %v3764_v55 = vshll.u32 %v6218_v21, 16  ;;  %v3998_v18 = vrot.slane %v3996_v35, 1  ;;  %vm2200_vm11 = vcmp.ge.s32.totalorder %v5643_v10, 1  ;;  %3633 = vrot.lane.b32.xlu0 %v3613_v48, %s5270_s20  ;;  %v6244_v35 = vld [vmem:[#allocation2 + $0x50] sm:$0x1] }
 0x16f   : > { %vm2210_vm12 = vcmp.le.s32.totalorder %v5643_v10, 16  ;;  %v3139_v23 = vsel %vm5998_vm5, %v3134_v2, %v3138_v26  ;;  %v4122_v39 = vsel %vm3604_vm3, %v4120_v52, %v4121_v62  ;;  %v4001_v8 = vshll.u32 %v5101_v45, 16 }
 0x170   : > { %v6240_v15 = vcombine.low %v6109_v59, %v6109_v59  ;;  %v4736_v19 = vcombine.low %v3129_v12, %v3139_v23  ;;  %v3503_v22 = vsel %vm3467_vm9, %v3498_v4, %v3502_v57  ;;  %v3999_v27 = vor.u32 %v3998_v18, %v3994_v46  ;;  %v6271_v18 = vld [vmem:[%s6931_s2] ss:$0 sm:$0xff]  ;;  %vm6285_vm0 = vmand %vm2200_vm11, %vm2210_vm12 }
 0x171   : > { %v4790_v7 = vcombine.low %v2978_v20, %v6090_v24  ;;  %3568 = vrot.lane.b32.xlu1 %v3503_v22, %s6942_s22  ;;  %v4003_v33 = vrot.slane %v4001_v8, 1  ;;  %v3141_v29 = vshrl.u32 %v6230_v17, 16  ;;  %v3144_v59 = vshll.u32 %v6230_v17, 16  ;;  %vm6300_vm1 = vmand %vm6285_vm0, %vm2256_vm6 }
 0x172   : > { %v3868_v6 = vrot.slane %v6240_v15, 1  ;;  %4950 = vmatprep.mubr.msk.bf16.mxu1 %vm3244_vm13, %v4736_v19  ;;  %v3150_v26 = vshll.u32 %v6242_v13, 16  ;;  %v3154_v43 = vshrl.u32 %v6242_v13, 16  ;;  %v3160_v44 = vshll.u32 %v6244_v35, 16  ;;  %4143 = vrot.lane.b32.xlu0 %v4122_v39, %s5275_s14 }
 0x173   : > { %v3867_v45 = vrot.slane %v4790_v7, 1  ;;  %v4004_v24 = vsel %vm3467_vm9, %v3999_v27, %v4003_v33  ;;  %v3143_v30 = vrot.slane %v3141_v29, 4  ;;  %v3146_v34 = vrot.slane %v3144_v59, 5  ;;  %v2979_v7 = vld [vmem:[#allocation2 + $0x30] sm:$0xe] }
 0x174   : > { %v3505_v47 = vshrl.u32 %v6153_v58, 16  ;;  %v3152_v61 = vrot.slane %v3150_v26, 5  ;;  %v3156_v53 = vrot.slane %v3154_v43, 4  ;;  %v3162_v54 = vrot.slane %v3160_v44, 5 }
 0x175   : > { %v3869_v57 = vsel %vm3604_vm3, %v3867_v45, %v3868_v6  ;;  %3691 = vrot.lane.b32.xlu1 %v6218_v21, %s6938_s17  ;;  %v3147_v52 = vor.u32 %v3146_v34, %v3143_v30  ;;  %v3507_v12 = vshll.u32 %v6153_v58, 16  ;;  %v3512_v2 = vshll.u32 %v6132_v9, 16  ;;  %s5276_s17 = smov 56   ;;  %v2989_v34 = vld [vmem:[#allocation2 + $0x30] sm:$0xf] }
 0x176   : > { %v3982_v62 = vshrl.u32 %v6141_v14, 16  ;;  %v3157_v46 = vor.u32 %v3156_v53, %v3152_v61  ;;  %v3986_v4 = vrot.slane %v3984_v1, 1  ;;  %v3989_v48 = vshll.u32 %v6179_v51, 16  ;;  %3889 = vrot.lane.b32.xlu0 %v3869_v57, %s5271_s21  ;;  %v3011_v53 = vld [vmem:[#allocation2 + $0x30] sm:$0xe] }
 0x177   : > { %v1744_v20 = vadd.f32 %v6271_v18, %v5874_v50  ;;  %v3148_v23 = vrot.slane %v3147_v52, 4  ;;  %v3509_v9 = vrot.slane %v3507_v12, 1  ;;  %v3514_v39 = vrot.slane %v3512_v2, 1  ;;  %v2990_v2 = vld [vmem:[#allocation2 + $0x34] sm:$0xf] }
 0x178   : > { %v1736_v8 = vadd.f32 %v6271_v18, %v5896_v49  ;;  %v3158_v14 = vrot.slane %v3157_v46, 4  ;;  %v3987_v1 = vor.u32 %v3986_v4, %v3982_v62  ;;  %v3991_v19 = vrot.slane %v3989_v48, 1  ;;  %v2991_v48 = vld [vmem:[#allocation2 + $0x3c] sm:$0xf] }
 0x179   : > { %v1771_v51 = vmax.f32 %v1744_v20, 0.0  ;;  %4079 = vrot.lane.b32.xlu1 %v4004_v24, %s5276_s17  ;;  %v3153_v22 = vsel %vm5998_vm5, %v3148_v23, %v3152_v61  ;;  %v3510_v27 = vor.u32 %v3509_v9, %v3505_v47  ;;  %vm2199_vm15 = vcmp.ge.s32.totalorder %v5681_v40, 1 }
 0x17a   : > { %v1769_v49 = vmax.f32 %v1736_v8, 0.0  ;;  %v3163_v33 = vsel %vm5998_vm5, %v3158_v14, %v3162_v54  ;;  %v3992_v6 = vsel %vm3467_vm9, %v3987_v1, %v3991_v19  ;;  %vm2209_vm4 = vcmp.le.s32.totalorder %v5681_v40, 16  ;;  %v6345_v1 = vld [vmem:[#allocation2 + $0x38] ss:$0 sps:$4 sm:$0x11]  }
 0x17b   : > { %v6294_v29 = vrot.slane %v1771_v51, %v5594_v36  ;;  %v4737_v59 = vcombine.low %v3153_v22, %v3163_v33  ;;  %v3515_v45 = vsel %vm3467_vm9, %v3510_v27, %v3514_v39  ;;  %4077 = vrot.lane.b32.xlu0 %v3992_v6, %s5276_s17  ;;  %vm2219_vm10 = vmand %vm2199_vm15, %vm2209_vm4  ;;  %v4783_v40 = vcombine.low %v6157_v63, %v6157_v63  ;;  %v6325_v63 = vld [vmem:[#allocation2 + $0x40] sm:$0xf]  ;;  %v6350_v51 = vld [vmem:[#allocation2 + $0x3c] sm:$0xe] }
 0x17c   : > { %v2135_v26 = vcombine.high %v1769_v49, %v1769_v49  ;;  %v2142_v43 = vrot.slane %v1769_v49, %v5594_v36  ;;  %vm2248_vm11 = vmand %vm2219_vm10, %vm2221_vm8  ;;  %v2752_v24 = vsel %vm2219_vm10, %v6134_v60, 0.0  ;;  %v4791_v30 = vcombine.low %v2979_v7, %v6155_v41  ;;  %v5110_v7 = vld [vmem:[#allocation2 + $0x38] ss:$0 sps:$4 sm:$0x11]  }
 0x17d   : > { %v2176_v44 = vcombine.high %v6294_v29, %v6294_v29  ;;  %4951 = vmatmul.mubr.msk.bf16.gmra.mxu1 %vm3244_vm13, %v4737_v59  ;;  %3570 = vrot.lane.b32.xlu1 %v3515_v45, %s6942_s22  ;;  %vm2283_vm12 = vmand %vm2219_vm10, %vm2256_vm6  ;;  %v2751_v60 = vsel %vm2248_vm11, %v6106_v16, 0.0  ;;  %v4872_v52 = vpack.c.bf16 %v2752_v24, %v2752_v24  ;;  %v3871_v4 = vrot.slane %v4783_v40, 1  ;;  %v6361_v45 = vld [vmem:[#allocation2 + $0x54] sm:$0xf]  ;;  %v2947_v24 = vld [vmem:[#allocation2 + $0x30] sm:$0xe] }
 0x17e   : > { %v6319_v47 = vrot.slane %v2135_v26, %v5594_v36  ;;  %v2150_v57 = vcombine.high %v2142_v43, %v2142_v43  ;;  %v2655_v61 = vrot.slane %v2142_v43, %v5594_v36  ;;  %v4871_v54 = vpack.c.bf16 %v2751_v60, %v2751_v60  ;;  %vm6445_vm6 = vmand %vm6285_vm0, %vm2221_vm8 }
 0x17f   : > { %v2696_v41 = vrot.slane %v2176_v44, %v5594_v36  ;;  %v3870_v12 = vrot.slane %v4791_v30, 1  ;;  %v6331_v32 = vcombine.low %v2989_v34, %v2990_v2  ;;  %2914 = vst.msk [vmem:[#allocation2 + $0x64] sm:$0xf] %vm2887_vm14, %v4872_v52  ;;  %v4814_v23 = vcombine.low %v3011_v53, %v2990_v2  ;;  %v2928_v2 = vld [vmem:[#allocation2 + $0x34] sm:$0xf] }
 0x180   : > { %v6329_v62 = vcombine.low %v2150_v57, %v6319_v47  ;;  %v2753_v46 = vsel %vm2283_vm12, %v2655_v61, 0.0  ;;  %2913 = vst.msk [vmem:[#allocation2 + $0x60] sm:$0xf] %vm2887_vm14, %v4871_v54  ;;  %v6338_v9 = vcombine.low %v2991_v48, %v6325_v63  ;;  %v3750_v27 = vshrl.u32 %v6167_v3, 16  ;;  %v6367_v57 = vld [vmem:[#allocation2 + $0x58] sm:$0xf] }
 0x181   : > { %v2756_v16 = vsel %vm6300_vm1, %v2696_v41, 0.0  ;;  %v4873_v20 = vpack.c.bf16 %v2753_v46, %v2753_v46  ;;  %v3872_v14 = vsel %vm3604_vm3, %v3870_v12, %v3871_v4  ;;  %3945 = vrot.lane.b32.xlu0 %v6331_v32, %s6940_s24  ;;  %v4008_v19 = vshll.u32 %v6331_v32, 16  ;;  %v2930_v46 = vld [vmem:[#allocation2 + $0x40] sm:$0xf] }
 0x182   : > { %v4876_v39 = vpack.c.bf16 %v2756_v16, %v2756_v16  ;;  %v2664_v8 = vrot.slane %v6329_v62, %v5594_v36  ;;  %3891 = vrot.lane.b32.xlu1 %v3872_v14, %s5271_s21  ;;  %v4020_v22 = vshll.u32 %v6338_v9, 16  ;;  %v3754_v49 = vrot.slane %v3752_v56, 1  ;;  %v2927_v56 = vld [vmem:[#allocation2 + $0x30] sm:$0xf] }
 0x183   : > { %2915 = vst.msk [vmem:[#allocation2 + $0x68] sm:$0x1] %vm2890_vm7, %v4873_v20  ;;  %v3757_v33 = vshll.u32 %v6240_v15, 16  ;;  %v3762_v6 = vshrl.u32 %v6218_v21, 16  ;;  %v3766_v10 = vrot.slane %v3764_v55, 1  ;;  %v3769_v59 = vshll.u32 %v4783_v40, 16 }
 0x184   : > { %2918 = vst.msk [vmem:[#allocation2 + $0x74] sm:$0x1] %vm2890_vm7, %v4876_v39  ;;  %v4815_v26 = vcombine.low %v6350_v51, %v6325_v63  ;;  %v3755_v43 = vor.u32 %v3754_v49, %v3750_v27  ;;  %v4123_v44 = vrot.slane %v4814_v23, 1  ;;  %v3165_v3 = vshrl.u32 %v6361_v45, 16  ;;  %v6372_v40 = vld [vmem:[#allocation2 + $0x5c] sm:$0x1] }
 0x185   : > { %v3759_v30 = vrot.slane %v3757_v33, 1  ;;  %v3767_v34 = vor.u32 %v3766_v10, %v3762_v6  ;;  %v4124_v15 = vrot.slane %v6345_v1, 1  ;;  %v3168_v21 = vshll.u32 %v6361_v45, 16  ;;  %v6382_v23 = vld [vmem:[#allocation2 + $0x44] ss:$0 sps:$4 sm:$0x11]  }
 0x186   : > { %3947 = vrot.lane.b32.xlu1 %v6338_v9, %s6940_s24  ;;  %v3771_v55 = vrot.slane %v3769_v59, 1  ;;  %v3167_v61 = vrot.slane %v3165_v3, 4  ;;  %v3174_v60 = vshll.u32 %v6367_v57, 16  ;;  %v3178_v53 = vshrl.u32 %v6367_v57, 16 }
 0x187   : > { %v3760_v41 = vsel %vm3467_vm9, %v3755_v43, %v3759_v30  ;;  %v4125_v54 = vsel %vm3604_vm3, %v4123_v44, %v4124_v15  ;;  %v3170_v52 = vrot.slane %v3168_v21, 5  ;;  %v3184_v12 = vshll.u32 %v6372_v40, 16  ;;  %v2948_v43 = vld [vmem:[#allocation2 + $0x3c] sm:$0xe]  ;;  %v1738_v15 = vpop.f32.mrf.mxu0 }
 0x188   : > { %3825 = vrot.lane.b32.xlu0 %v3760_v41, %s5274_s25  ;;  %v3176_v4 = vrot.slane %v3174_v60, 5  ;;  %v3180_v48 = vrot.slane %v3178_v53, 4  ;;  %v6380_v16 = vcombine.low %v2927_v56, %v2928_v2  ;;  %v3524_v20 = vshll.u32 %v5110_v7, 16 }
 0x189   : > { %v3772_v39 = vsel %vm3467_vm9, %v3767_v34, %v3771_v55  ;;  %v3171_v14 = vor.u32 %v3170_v52, %v3167_v61  ;;  %v3186_v27 = vrot.slane %v3184_v12, 5  ;;  %v4768_v49 = vcombine.low %v2947_v24, %v2928_v2  ;;  %v2929_v55 = vld [vmem:[#allocation2 + $0x3c] sm:$0xf] }
 0x18a   : > { %3827 = vrot.lane.b32.xlu1 %v3772_v39, %s5274_s25  ;;  %v3181_v33 = vor.u32 %v3180_v48, %v3176_v4  ;;  %v3517_v6 = vshrl.u32 %v6380_v16, 16  ;;  %v3519_v10 = vshll.u32 %v6380_v16, 16  ;;  %v3618_v59 = vrot.slane %v5110_v7, 1 }
 0x18b   : > { %v3172_v44 = vrot.slane %v3171_v14, 4  ;;  %v3526_v3 = vrot.slane %v3524_v20, 1  ;;  %v3617_v56 = vrot.slane %v4768_v49, 1  ;;  %v4769_v30 = vcombine.low %v2948_v43, %v2930_v46  ;;  %v5115_v20 = vld [vmem:[#allocation2 + $0x44] ss:$0 sps:$4 sm:$0x11]  }
 0x18c   : > { %4145 = vrot.lane.b32.xlu0 %v4125_v54, %s5275_s14  ;;  %v3182_v34 = vrot.slane %v3181_v33, 4  ;;  %v3521_v21 = vrot.slane %v3519_v10, 1  ;;  %v3621_v24 = vrot.slane %v6382_v23, 1  ;;  %v6392_v61 = vcombine.low %v6183_v0, %v6188_v37 }
 0x18d   : > { %v3177_v7 = vsel %vm5998_vm5, %v3172_v44, %v3176_v4  ;;  %v3619_v60 = vsel %vm3604_vm3, %v3617_v56, %v3618_v59  ;;  %v6397_v53 = vcombine.low %v2929_v55, %v2930_v46  ;;  %v3620_v41 = vrot.slane %v4769_v30, 1  ;;  %v6430_v30 = vld [vmem:[#allocation2 + $0x64] sm:$0xf] }
 0x18e   : > { %v3187_v54 = vsel %vm5998_vm5, %v3182_v34, %v3186_v27  ;;  %v3522_v52 = vor.u32 %v3521_v21, %v3517_v6  ;;  %v6403_v12 = vcombine.low %v6230_v17, %v6242_v13  ;;  %v1739_v2 = vadd.f32 %v6271_v18, %v1738_v15  ;;  %v6421_v6 = vld [vmem:[#allocation2 + $0x60] sm:$0xf]  ;;  %v6432_v15 = vld [vmem:[#allocation2 + $0x68] sm:$0x1] }
 0x18f   : > { %v4738_v0 = vcombine.low %v3177_v7, %v3187_v54  ;;  %v3622_v48 = vsel %vm3604_vm3, %v3620_v41, %v3621_v24  ;;  %v3776_v4 = vshll.u32 %v6392_v61, 16  ;;  %v2151_v46 = vcombine.high %v6319_v47, %v6319_v47 }
 0x190   : > { %v3527_v39 = vsel %vm3467_vm9, %v3522_v52, %v3526_v3  ;;  %3637 = vrot.lane.b32.xlu0 %v3619_v60, %s5270_s20  ;;  %v1770_v14 = vmax.f32 %v1739_v2, 0.0  ;;  %v4006_v27 = vshrl.u32 %v6331_v32, 16  ;;  %v4010_v17 = vrot.slane %v4008_v19, 1 }
 0x191   : > { %4954 = vmatprep.mubr.msk.bf16.mxu1 %vm3244_vm13, %v4738_v0  ;;  %3572 = vrot.lane.b32.xlu1 %v3527_v39, %s6942_s22  ;;  %v4013_v18 = vshll.u32 %v6345_v1, 16  ;;  %v4018_v49 = vshrl.u32 %v6338_v9, 16  ;;  %v4022_v47 = vrot.slane %v4020_v22, 1  ;;  %v4025_v33 = vshll.u32 %v5115_v20, 16 }
 0x192   : > { %v2152_v10 = vcombine.high %v1770_v14, %v1770_v14  ;;  %v2159_v59 = vrot.slane %v1770_v14, %v5594_v36  ;;  %v4011_v43 = vor.u32 %v4010_v17, %v4006_v27  ;;  %v4126_v32 = vrot.slane %v4815_v26, 1 }
 0x193   : > { %v4015_v19 = vrot.slane %v4013_v18, 1  ;;  %v4023_v44 = vor.u32 %v4022_v47, %v4018_v49  ;;  %v4027_v3 = vrot.slane %v4025_v33, 1  ;;  %v4127_v1 = vrot.slane %v5115_v20, 1 }
 0x194   : > { %3693 = vrot.lane.b32.xlu0 %v6392_v61, %s6998_s26  ;;  %v2166_v9 = vrot.slane %v2152_v10, %v5594_v36  ;;  %v2167_v22 = vcombine.high %v2159_v59, %v2159_v59  ;;  %v2657_v56 = vcombine.low %v2151_v46, %v2159_v59  ;;  %v3189_v34 = vshrl.u32 %v6421_v6, 16  ;;  %v2980_v10 = vld [vmem:[#allocation2 + $0x3c] sm:$0xe] }
 0x195   : > { %3639 = vrot.lane.b32.xlu1 %v3622_v48, %s5270_s20  ;;  %v4016_v63 = vsel %vm3467_vm9, %v4011_v43, %v4015_v19  ;;  %v4028_v51 = vsel %vm3467_vm9, %v4023_v44, %v4027_v3  ;;  %v4128_v26 = vsel %vm3604_vm3, %v4126_v32, %v4127_v1  ;;  %v3192_v21 = vshll.u32 %v6421_v6, 16  ;;  %v2981_v43 = vld [vmem:[#allocation2 + $0x48] sm:$0xe] }
 0x196   : > { %v2168_v55 = vcombine.high %v2166_v9, %v2166_v9  ;;  %v2671_v24 = vrot.slane %v2657_v56, %v5594_v36  ;;  %v2673_v7 = vcombine.low %v2167_v22, %v2166_v9  ;;  %v3191_v60 = vrot.slane %v3189_v34, 4 }
 0x197   : > { %v3194_v54 = vrot.slane %v3192_v21, 5  ;;  %v3198_v52 = vshll.u32 %v6430_v30, 16  ;;  %v3202_v2 = vshrl.u32 %v6430_v30, 16  ;;  %v3208_v0 = vshll.u32 %v6432_v15, 16 }
 0x198   : > { %v2672_v48 = vcombine.low %v2664_v8, %v2671_v24  ;;  %v2674_v46 = vcombine.low %v2168_v55, %v6294_v29  ;;  %v2681_v5 = vrot.slane %v2673_v7, %v5594_v36  ;;  %4081 = vrot.lane.b32.xlu0 %v4016_v63, %s5276_s17  ;;  %v3529_v20 = vshrl.u32 %v6397_v53, 16 }
 0x199   : > { %3695 = vrot.lane.b32.xlu1 %v6403_v12, %s6998_s26  ;;  %v3195_v39 = vor.u32 %v3194_v54, %v3191_v60  ;;  %v3200_v14 = vrot.slane %v3198_v52, 5  ;;  %v3204_v27 = vrot.slane %v3202_v2, 4  ;;  %v3210_v17 = vrot.slane %v3208_v0, 5  ;;  %v2994_v60 = vld [vmem:[#allocation2 + $0x4c] sm:$0xf] }
 0x19a   : > { %v2688_v18 = vrot.slane %v2674_v46, %v5594_v36  ;;  %v2754_v62 = vsel %vm6445_vm6, %v2672_v48, 0.0  ;;  %v3531_v29 = vshll.u32 %v6397_v53, 16  ;;  %v3536_v8 = vshll.u32 %v6382_v23, 16  ;;  %v2932_v2 = vld [vmem:[#allocation2 + $0x4c] sm:$0xf] }
 0x19b   : > { %v4874_v49 = vpack.c.bf16 %v2754_v62, %v2754_v62  ;;  %v3196_v47 = vrot.slane %v3195_v39, 4  ;;  %v3205_v33 = vor.u32 %v3204_v27, %v3200_v14  ;;  %v4784_v59 = vcombine.low %v6202_v38, %v6202_v38  ;;  %v2995_v46 = vld [vmem:[#allocation2 + $0x54] sm:$0xf] }
 0x19c   : > { %v2689_v32 = vcombine.low %v2681_v5, %v2688_v18  ;;  %4147 = vrot.lane.b32.xlu0 %v4128_v26, %s5275_s14  ;;  %v3533_v19 = vrot.slane %v3531_v29, 1  ;;  %v3538_v36 = vrot.slane %v3536_v8, 1  ;;  %v4792_v44 = vcombine.low %v2980_v10, %v6188_v37  ;;  %v3013_v26 = vld [vmem:[#allocation2 + $0x48] sm:$0xe]  ;;  %v6495_v5 = vld [vmem:[#allocation2 + $0x58] sm:$0xf] }
 0x19d   : > { %2916 = vst.msk [vmem:[#allocation2 + $0x6c] sm:$0xf] %vm2887_vm14, %v4874_v49  ;;  %4083 = vrot.lane.b32.xlu1 %v4028_v51, %s5276_s17  ;;  %v3201_v23 = vsel %vm5998_vm5, %v3196_v47, %v3200_v14  ;;  %v3206_v3 = vrot.slane %v3205_v33, 4  ;;  %v3874_v1 = vrot.slane %v4784_v59, 1  ;;  %v4785_v38 = vcombine.low %v6244_v35, %v6244_v35  ;;  %v2993_v35 = vld [vmem:[#allocation2 + $0x48] sm:$0xf] }
 0x19e   : > { %v2755_v9 = vsel %vm6285_vm0, %v2689_v32, 0.0  ;;  %v3534_v22 = vor.u32 %v3533_v19, %v3529_v20  ;;  %v3873_v56 = vrot.slane %v4792_v44, 1  ;;  %v4793_v34 = vcombine.low %v2981_v43, %v6242_v13  ;;  %v6486_v13 = vld [vmem:[#allocation2 + $0x50] ss:$0 sps:$4 sm:$0x11]  }
 0x19f   : > { %v4875_v37 = vpack.c.bf16 %v2755_v9, %v2755_v9  ;;  %v3211_v63 = vsel %vm5998_vm5, %v3206_v3, %v3210_v17  ;;  %v3877_v51 = vrot.slane %v4785_v38, 1  ;;  %v4816_v50 = vcombine.low %v3013_v26, %v2994_v60  ;;  %v5123_v18 = vld [vmem:[#allocation2 + $0x50] ss:$0 sps:$4 sm:$0x11]   ;;  %v2983_v26 = vld [vmem:[#allocation2 + $0x60] sm:$0xe] }
 0x1a0   : > { %v4739_v21 = vcombine.low %v3201_v23, %v3211_v63  ;;  %v3539_v55 = vsel %vm3467_vm9, %v3534_v22, %v3538_v36  ;;  %v3875_v24 = vsel %vm3604_vm3, %v3873_v56, %v3874_v1  ;;  %v3876_v7 = vrot.slane %v4793_v34, 1  ;;  %v2950_v36 = vld [vmem:[#allocation2 + $0x54] sm:$0xe]  ;;  %v5126_v9 = vld [vmem:[#allocation2 + $0x5c] ss:$0 sps:$4 sm:$0x11]  }
 0x1a1   : > { %2917 = vst.msk [vmem:[#allocation2 + $0x70] sm:$0xf] %vm2887_vm14, %v4875_v37  ;;  %3574 = vrot.lane.b32.xlu1 %v3539_v55, %s6942_s22  ;;  %3893 = vrot.lane.b32.xlu0 %v3875_v24, %s5271_s21  ;;  %v3774_v41 = vshrl.u32 %v6392_v61, 16  ;;  %v3778_v54 = vrot.slane %v3776_v4, 1  ;;  %v3781_v52 = vshll.u32 %v4784_v59, 16  ;;  %v3788_v0 = vshll.u32 %v6403_v12, 16 }
 0x1a2   : > { %4955 = vmatmul.mubr.msk.bf16.gmra.mxu1 %vm3244_vm13, %v4739_v21  ;;  %v6493_v48 = vcombine.low %v2993_v35, %v2994_v60  ;;  %v3878_v20 = vsel %vm3604_vm3, %v3876_v7, %v3877_v51  ;;  %v2949_v61 = vld [vmem:[#allocation2 + $0x48] sm:$0xe]  ;;  %v6501_v4 = vcombine.low %v2931_v28, %v2932_v2  ;;  %v6504_v27 = vcombine.low %v2995_v46, %v6495_v5  ;;  %v2933_v56 = vld [vmem:[#allocation2 + $0x54] sm:$0xf]  ;;  %v2997_v28 = vld [vmem:[#allocation2 + $0x60] sm:$0xf] }
 0x1a3   : > { %v3779_v39 = vor.u32 %v3778_v54, %v3774_v41  ;;  %v3783_v14 = vrot.slane %v3781_v52, 1  ;;  %v4129_v17 = vrot.slane %v4816_v50, 1  ;;  %v4130_v62 = vrot.slane %v6486_v13, 1  ;;  %v3014_v21 = vld [vmem:[#allocation2 + $0x54] sm:$0xe] }
 0x1a4   : > { %v3786_v29 = vshrl.u32 %v6403_v12, 16  ;;  %v3790_v8 = vrot.slane %v3788_v0, 1  ;;  %v3793_v49 = vshll.u32 %v4785_v38, 16  ;;  %v4770_v33 = vcombine.low %v2949_v61, %v2932_v2  ;;  %v2934_v38 = vld [vmem:[#allocation2 + $0x58] sm:$0xf] }
 0x1a5   : > { %3895 = vrot.lane.b32.xlu1 %v3878_v20, %s5271_s21  ;;  %3949 = vrot.lane.b32.xlu0 %v6493_v48, %s6940_s24  ;;  %v3784_v47 = vsel %vm3467_vm9, %v3779_v39, %v3783_v14  ;;  %v3543_v10 = vshll.u32 %v6501_v4, 16  ;;  %v6515_v59 = vcombine.low %v6421_v6, %v6430_v30  ;;  %v4131_v43 = vsel %vm3604_vm3, %v4129_v17, %v4130_v62  ;;  %v6535_v50 = vld [vmem:[#allocation2 + $0x64] sm:$0xf]  ;;  %v5132_v20 = vld [vmem:[#allocation2 + $0x5c] ss:$0 sps:$4 sm:$0x11]  }
 0x1a6   : > { %v3791_v32 = vor.u32 %v3790_v8, %v3786_v29  ;;  %v3795_v12 = vrot.slane %v3793_v49, 1  ;;  %v3624_v19 = vrot.slane %v5123_v18, 1  ;;  %v3623_v44 = vrot.slane %v4770_v33, 1  ;;  %v6533_v60 = vpop.permute.xlu0 %3685  ;;  %v2982_v8 = vld [vmem:[#allocation2 + $0x54] sm:$0xe] }
 0x1a7   : > { %v3541_v23 = vshrl.u32 %v6501_v4, 16  ;;  %v3545_v3 = vrot.slane %v3543_v10, 1  ;;  %v3548_v1 = vshll.u32 %v5123_v18, 16  ;;  %v4771_v6 = vcombine.low %v2950_v36, %v2934_v38 }
 0x1a8   : > { %v4032_v22 = vshll.u32 %v6493_v48, 16  ;;  %v3796_v34 = vsel %vm3467_vm9, %v3791_v32, %v3795_v12  ;;  %v3625_v37 = vsel %vm3604_vm3, %v3623_v44, %v3624_v19  ;;  %v6529_v55 = vcombine.low %v6361_v45, %v6367_v57 }
 0x1a9   : > { %3951 = vrot.lane.b32.xlu1 %v6504_v27, %s6940_s24  ;;  %3829 = vrot.lane.b32.xlu0 %v3784_v47, %s5274_s25  ;;  %v3546_v63 = vor.u32 %v3545_v3, %v3541_v23  ;;  %v3550_v51 = vrot.slane %v3548_v1, 1  ;;  %v6531_v24 = vcombine.low %v2933_v56, %v2934_v38  ;;  %v3626_v7 = vrot.slane %v4771_v6, 1  ;;  %v5138_v38 = vld [vmem:[%s6934_s5 + $0x18] sm:$0xff]   ;;  %v6578_v56 = vld [vmem:[#allocation2 + $0x70] sm:$0xf] }
 0x1aa   : > { %v3627_v35 = vrot.slane %v5126_v9, 1  ;;  %v6539_v41 = vcombine.low %v6432_v15, %v6432_v15  ;;  %v4795_v54 = vcombine.low %v2983_v26, %v6430_v30  ;;  %v4030_v52 = vshrl.u32 %v6493_v48, 16 }
 0x1ab   : > { %v4034_v2 = vrot.slane %v4032_v22, 1  ;;  %v4044_v45 = vshll.u32 %v6504_v27, 16  ;;  %v3551_v0 = vsel %vm3467_vm9, %v3546_v63, %v3550_v51  ;;  %v4037_v46 = vshll.u32 %v6486_v13, 16 }
 0x1ac   : > { %v4817_v15 = vcombine.low %v3014_v21, %v6495_v5  ;;  %v6551_v39 = vcombine.low %v2997_v28, %v6535_v50  ;;  %v3555_v30 = vshll.u32 %v6531_v24, 16  ;;  %v3628_v48 = vsel %vm3604_vm3, %v3626_v7, %v3627_v35 }
 0x1ad   : > { %3699 = vrot.lane.b32.xlu1 %v6515_v59, %s6998_s26  ;;  %4149 = vrot.lane.b32.xlu0 %v4131_v43, %s5275_s14  ;;  %v3882_v14 = vrot.slane %v4795_v54, 1  ;;  %v3883_v61 = vrot.slane %v6539_v41, 1  ;;  %v4035_v17 = vor.u32 %v4034_v2, %v4030_v52  ;;  %v4039_v13 = vrot.slane %v4037_v46, 1  ;;  %v5135_v2 = vld [vmem:[#allocation2 + $0x68] ss:$0 sps:$4 sm:$0x11]  }
 0x1ae   : > { %v4042_v18 = vshrl.u32 %v6504_v27, 16  ;;  %v4046_v62 = vrot.slane %v4044_v45, 1  ;;  %v4049_v29 = vshll.u32 %v5132_v20, 16  ;;  %v3560_v5 = vshll.u32 %v5126_v9, 16  ;;  %v6564_v33 = vpop.permute.xlu1 %3629 }
 0x1af   : > { %v4786_v47 = vcombine.low %v6372_v40, %v6372_v40  ;;  %v3812_v10 = vshll.u32 %v6515_v59, 16  ;;  %v3553_v27 = vshrl.u32 %v6531_v24, 16  ;;  %v3557_v43 = vrot.slane %v3555_v30, 1  ;;  %v2999_v40 = vld [vmem:[#allocation2 + $0x6c] sm:$0xf] }
 0x1b0   : > { %v3800_v32 = vshll.u32 %v6529_v55, 16  ;;  %v3884_v12 = vsel %vm3604_vm3, %v3882_v14, %v3883_v61  ;;  %v4132_v19 = vrot.slane %v4817_v15, 1  ;;  %v4794_v36 = vcombine.low %v2982_v8, %v6367_v57  ;;  %v5136_v30 = vld [vmem:[#allocation2 + $0x74] ss:$0 sps:$4 sm:$0x11]  }
 0x1b1   : > { %3831 = vrot.lane.b32.xlu1 %v3796_v34, %s5274_s25  ;;  %3641 = vrot.lane.b32.xlu0 %v3625_v37, %s5270_s20  ;;  %v6557_v49 = vpop.permute.xlu0 %3885  ;;  %v4040_v44 = vsel %vm3467_vm9, %v4035_v17, %v4039_v13  ;;  %v4047_v23 = vor.u32 %v4046_v62, %v4042_v18  ;;  %v4051_v3 = vrot.slane %v4049_v29, 1  ;;  %v4133_v1 = vrot.slane %v5132_v20, 1  ;;  %v3015_v14 = vld [vmem:[#allocation2 + $0x60] sm:$0xe] }
 0x1b2   : > { %v3562_v9 = vrot.slane %v3560_v5, 1  ;;  %v3880_v6 = vrot.slane %v4786_v47, 1  ;;  %v3810_v22 = vshrl.u32 %v6515_v59, 16  ;;  %v3558_v57 = vor.u32 %v3557_v43, %v3553_v27  ;;  %v3016_v27 = vld [vmem:[#allocation2 + $0x6c] sm:$0xe] }
 0x1b3   : > { %v3814_v34 = vrot.slane %v3812_v10, 1  ;;  %v3817_v37 = vshll.u32 %v6539_v41, 16  ;;  %v4352_v51 = vsel %vm3269_vm2, %v6148_v42, 0  ;;  %v3879_v26 = vrot.slane %v4794_v36, 1  ;;  %v6586_v28 = vpop.permute.xlu1 %3631  ;;  %v5139_v42 = vld [vmem:[%s6934_s5 + $0x10] sm:$0xff]  }
 0x1b4   : > { %v3798_v21 = vshrl.u32 %v6529_v55, 16  ;;  %v3802_v7 = vrot.slane %v3800_v32, 1  ;;  %v3805_v35 = vshll.u32 %v4786_v47, 16  ;;  %4959 = vmatpush3.bf16.msra.mxu1 %v4352_v51  ;;  %v4056_v59 = vshll.u32 %v6551_v39, 16 }
 0x1b5   : > { %3576 = vrot.lane.b32.xlu1 %v3551_v0, %s6942_s22  ;;  %3697 = vrot.lane.b32.xlu0 %v6529_v55, %s6998_s26  ;;  %v4052_v54 = vsel %vm3467_vm9, %v4047_v23, %v4051_v3  ;;  %v4134_v52 = vsel %vm3604_vm3, %v4132_v19, %v4133_v1  ;;  %v4803_v41 = vcombine.low %v2999_v40, %v6578_v56  ;;  %v3819_v45 = vrot.slane %v3817_v37, 1  ;;  %v5141_v19 = vld [vmem:[%s6934_s5] sm:$0xff]   ;;  %s4838_s26 = sshll.u32 %s5253_s9, 5  ;;  %s5277_s9 = smov [#allocation3]  }
 0x1b6   : > { %v6581_v63 = vpop.permute.xlu0 %3564  ;;  %4960 = vmatprep.subr.bf16.mxu1 %v5138_v38  ;;  %v3815_v55 = vor.u32 %v3814_v34, %v3810_v22  ;;  %v3563_v0 = vsel %vm3467_vm9, %v3558_v57, %v3562_v9  ;;  %v3881_v46 = vsel %vm3604_vm3, %v3879_v26, %v3880_v6  ;;  %v3803_v20 = vor.u32 %v3802_v7, %v3798_v21 }
 0x1b7   : > { %v3807_v15 = vrot.slane %v3805_v35, 1  ;;  %v4068_v61 = vshll.u32 %v4803_v41, 16  ;;  %v4054_v17 = vshrl.u32 %v6551_v39, 16  ;;  %v4058_v13 = vrot.slane %v4056_v59, 1  ;;  %v3688_v29 = vpop.permute.xlu1 %3687 }
 0x1b8   : > { %4961 = vmatpush3.bf16.msra.mxu1 %v5138_v38  ;;  %v4061_v18 = vshll.u32 %v5135_v2, 16  ;;  %v4818_v8 = vcombine.low %v3015_v14, %v6535_v50  ;;  %v3820_v5 = vsel %vm3467_vm9, %v3815_v55, %v3819_v45  ;;  %v4066_v10 = vshrl.u32 %v4803_v41, 16 }
 0x1b9   : > { %3643 = vrot.lane.b32.xlu1 %v3628_v48, %s5270_s20  ;;  %3953 = vrot.lane.b32.xlu0 %v6551_v39, %s6940_s24  ;;  %v5140_v48 = vld [vmem:[%s6934_s5 + $0x8] sm:$0xff]   ;;  %v3808_v47 = vsel %vm3467_vm9, %v3803_v20, %v3807_v15  ;;  %v4059_v43 = vor.u32 %v4058_v13, %v4054_v17  ;;  %v4070_v32 = vrot.slane %v4068_v61, 1  ;;  %v4819_v36 = vcombine.low %v3016_v27, %v6578_v56  ;;  %s4877_s24 = sshll.u32 %s5249_s30, 4 }
 0x1ba   : > { %4962 = vmatprep.subr.bf16.mxu1 %v5139_v42  ;;  %v4063_v39 = vrot.slane %v4061_v18, 1  ;;  %v4136_v38 = vrot.slane %v5135_v2, 1  ;;  %v4139_v56 = vrot.slane %v5136_v30, 1  ;;  %vm3386_vm2 = vcmask 130048  }
 0x1bb   : > { %v3944_v23 = vpop.permute.xlu1 %3943  ;;  %v4071_v1 = vor.u32 %v4070_v32, %v4066_v10  ;;  %v4138_v22 = vrot.slane %v4819_v36, 1  ;;  %vm4189_vm7 = vcmask 195584   ;;  %vm4206_vm8 = vcmask 261120  }
 0x1bc   : > { %4963 = vmatpush3.bf16.msra.mxu1 %v5139_v42  ;;  %v4064_v3 = vsel %vm3467_vm9, %v4059_v43, %v4063_v39  ;;  %vm4223_vm14 = vcmask 326656   ;;  %vm4274_vm5 = vcmask 523264   ;;  %vm4334_vm0 = vcmask 588800  }
 0x1bd   : > { %3899 = vrot.lane.b32.xlu1 %v3884_v12, %s5271_s21  ;;  %4085 = vrot.lane.b32.xlu0 %v4040_v44, %s5276_s17  ;;  %v4073_v12 = vshll.u32 %v5136_v30, 16  ;;  %v4135_v44 = vrot.slane %v4818_v8, 1  ;;  %v4140_v37 = vsel %vm3604_vm3, %v4138_v22, %v4139_v56 }
 0x1be   : > { %v3567_v62 = vpop.permute.xlu0 %3566  ;;  %4964 = vmatprep.subr.bf16.mxu1 %v5140_v48 }
 0x1bf   : > { %v4075_v40 = vrot.slane %v4073_v12, 1  ;;  %v4137_v6 = vsel %vm3604_vm3, %v4135_v44, %v4136_v38  ;;  %v4160_v35 = vsel %vm3244_vm13, %v5990_v25, %v3567_v62  ;;  %vm4240_vm3 = vcmask 392192  }
 0x1c0   : > { %4965 = vmatpush3.bf16.msra.mxu1 %v5140_v48 }
 0x1c1   : > { %4087 = vrot.lane.b32.xlu1 %v4052_v54, %s5276_s17  ;;  %4151 = vrot.lane.b32.xlu0 %v4134_v52, %s5275_s14  ;;  %v4076_v9 = vsel %vm3467_vm9, %v4071_v1, %v4075_v40  ;;  %v4158_v54 = vsel %vm3244_vm13, %v5977_v11, %v6581_v63  ;;  %v4176_v52 = vsel %vm3386_vm2, %v4160_v35, %v6586_v28  ;;  %vm4257_vm9 = vcmask 457728   ;;  %v6667_v40 = vld [vmem:[%s6933_s4] ss:$0 sm:$0xff] }
 0x1c2   : > { %v3822_v50 = vpop.permute.xlu0 %3821  ;;  %4966 = vmatprep.subr.bf16.mxu1 %v5141_v19  ;;  %v4174_v2 = vsel %vm3386_vm2, %v4158_v54, %v6564_v33  ;;  %v4193_v42 = vsel %vm4189_vm7, %v4176_v52, %v3688_v29 }
 0x1c4   : > { %4967 = vmatpush3.bf16.msra.mxu1 %v5141_v19 }
 0x1c5   : > { %3578 = vrot.lane.b32.xlu1 %v3563_v0, %s6942_s22  ;;  %3897 = vrot.lane.b32.xlu0 %v3881_v46, %s5271_s21  ;;  %s7001_s21 = smov 48   ;;  %v4191_v0 = vsel %vm4189_vm7, %v4174_v2, %v6533_v60 }
 0x1c6   : > { %v4208_v11 = vsel %vm4206_vm8, %v4191_v0, %v3822_v50 }
 0x1c7   : > { %v4225_v33 = vsel %vm4223_vm14, %v4208_v11, %v6557_v49 }
 0x1c9   : > { %3835 = vrot.lane.b32.xlu1 %v3820_v5, %s5274_s25  ;;  %3833 = vrot.lane.b32.xlu0 %v3808_v47, %s5274_s25 }
 0x1cd   : > { %3955 = vrot.lane.b32.xlu1 %v4803_v41, %s7001_s21  ;;  %4089 = vrot.lane.b32.xlu0 %v4064_v3, %s5276_s17  ;;  %s6771_s21 = sadd.s32 %s4877_s24, %s4838_s26 }
 0x1d0   : > { %v3942_v57 = vpop.permute.xlu0 %3941  ;;  %v3888_v34 = vpop.permute.xlu1 %3887 }
 0x1d1   : > { %4091 = vrot.lane.b32.xlu1 %v4076_v9, %s5276_s17  ;;  %4153 = vrot.lane.b32.xlu0 %v4137_v6, %s5275_s14  ;;  %v4242_v15 = vsel %vm4240_vm3, %v4225_v33, %v3942_v57  ;;  %s6660_s17 = sand.u32 1, %s5241_s28  }
 0x1d2   : > { %s6941_s20 = sshll.u32 %s6660_s17, 7 }
 0x1d3   : > { %s6681_s13 = scalar_lea.vmem [#allocation3], %s6941_s20 }
 0x1d4   : > { %v3690_v51 = vpop.permute.xlu0 %3689  ;;  %v3636_v26 = vpop.permute.xlu1 %3635  ;;  %s4505_s25 = sshll.u32 %s6681_s13, 4  ;;  %s6775_s25 = int_to_ptr.vmem [resolvable:$true] %s4505_s25 }
 0x1d5   : > { %4155 = vrot.lane.b32.xlu1 %v4140_v37, %s5275_s14  ;;  %s6944_s14 = sshll.u32 %s6771_s21, 7  ;;  %s5143_s30 = scalar_lea.vmem %s6775_s25, 2048 }
 0x1d6   : > { %s6782_s0 = scalar_lea.hbm %s6936_s7, %s6944_s14  ;;  %p5144_p13 = scmp.ne.s32.totalorder %s6775_s25, %s5143_s30 }
 0x1d8   : > { %p5145_p0 = pnand %p5144_p13, %p5376_p3 }
 0x1d9   : > { %v4142_v21 = vpop.permute.xlu0 %4141 }
 0x1da   : > { %v3824_v7 = vpop.permute.xlu1 %3823  ;;  %p5146_p1 = pneg %p5145_p0 }
 0x1db   : > { %v4210_v25 = vsel %vm4206_vm8, %v4193_v42, %v3824_v7 }
 0x1dc   : > { %v4227_v63 = vsel %vm4223_vm14, %v4210_v25, %v3888_v34 }
 0x1dd   : > { %v4244_v20 = vsel %vm4240_vm3, %v4227_v63, %v3944_v23 }
 0x1e0   : > { %v3634_v59 = vpop.permute.xlu0 %3633 }
 0x1e3   : > { %v3569_v41 = vpop.permute.xlu1 %3568 }
 0x1e4   : > { %v4144_v55 = vpop.permute.xlu0 %4143  ;;  %v4162_v29 = vsel %vm3244_vm13, %v6211_v31, %v3569_v41 }
 0x1e5   : > { %v4178_v47 = vsel %vm3386_vm2, %v4162_v29, %v3634_v59 }
 0x1e6   : > { %v4195_v43 = vsel %vm4189_vm7, %v4178_v47, %v3690_v51 }
 0x1e7   : > { %v3692_v45 = vpop.permute.xlu1 %3691 }
 0x1e8   : > { %v3890_v28 = vpop.permute.xlu0 %3889 }
 0x1eb   : > { %v4080_v46 = vpop.permute.xlu1 %4079 }
 0x1ec   : > { %v4261_v30 = vsel %vm4257_vm9, %v4244_v20, %v4080_v46 }
 0x1ed   : > { %v4078_v60 = vpop.permute.xlu0 %4077  ;;  %v4278_v17 = vsel %vm4274_vm5, %v4261_v30, %v4144_v55 }
 0x1ee   : > { %v4259_v48 = vsel %vm4257_vm9, %v4242_v15, %v4078_v60 }
 0x1ef   : > { %v3571_v14 = vpop.permute.xlu1 %3570  ;;  %v4276_v61 = vsel %vm4274_vm5, %v4259_v48, %v4142_v21 }
 0x1f0   : > { %4968 = vmatprep.mubr.msk.bf16.mxu1 %vm4334_vm0, %v4276_v61  ;;  %v4164_v10 = vsel %vm3244_vm13, %v6153_v58, %v3571_v14 }
 0x1f1   : > { %4969 = vmatmul.mubr.msk.bf16.vlgmr.msra.gmra.mxu1 %vm4334_vm0, %v4278_v17  ;;  %v4180_v12 = vsel %vm3386_vm2, %v4164_v10, %v3636_v26 }
 0x1f2   : > { %v4197_v31 = vsel %vm4189_vm7, %v4180_v12, %v3692_v45 }
 0x1f3   : > { %v3946_v13 = vpop.permute.xlu0 %3945 }
 0x1f4   : > { %v3892_v49 = vpop.permute.xlu1 %3891 }
 0x1f8   : > { %v3948_v18 = vpop.permute.xlu1 %3947 }
 0x1fa   : > { %v3826_v62 = vpop.permute.xlu0 %3825 }
 0x1fb   : > { %v4212_v32 = vsel %vm4206_vm8, %v4195_v43, %v3826_v62 }
 0x1fc   : > { %v3828_v8 = vpop.permute.xlu1 %3827  ;;  %v4229_v50 = vsel %vm4223_vm14, %v4212_v32, %v3890_v28 }
 0x1fd   : > { %v4214_v44 = vsel %vm4206_vm8, %v4197_v31, %v3828_v8  ;;  %v4246_v58 = vsel %vm4240_vm3, %v4229_v50, %v3946_v13 }
 0x1fe   : > { %v4146_v5 = vpop.permute.xlu0 %4145  ;;  %v4231_v38 = vsel %vm4223_vm14, %v4214_v44, %v3892_v49 }
 0x1ff   : > { %v4248_v57 = vsel %vm4240_vm3, %v4231_v38, %v3948_v18 }
 0x202   : > { %v3638_v27 = vpop.permute.xlu0 %3637 }
 0x203   : > { %v3573_v39 = vpop.permute.xlu1 %3572 }
 0x204   : > { %v4166_v15 = vsel %vm3244_vm13, %v6380_v16, %v3573_v39 }
 0x205   : > { %v4182_v60 = vsel %vm3386_vm2, %v4166_v15, %v3638_v27 }
 0x206   : > { %v3694_v19 = vpop.permute.xlu0 %3693 }
 0x207   : > { %v3640_v36 = vpop.permute.xlu1 %3639  ;;  %v4199_v61 = vsel %vm4189_vm7, %v4182_v60, %v3694_v19 }
 0x20a   : > { %v4082_v23 = vpop.permute.xlu0 %4081 }
 0x20b   : > { %v3696_v3 = vpop.permute.xlu1 %3695  ;;  %v4263_v1 = vsel %vm4257_vm9, %v4246_v58, %v4082_v23  ;;  %v4944_v6 = vpop.f32.mrf.mxu0 }
 0x20c   : > { %v4280_v9 = vsel %vm4274_vm5, %v4263_v1, %v4146_v5  ;;  %v3316_v56 = vadd.f32 %v4944_v6, %v6667_v40 }
 0x20d   : > { %4972 = vmatprep.mubr.msk.bf16.mxu1 %vm4334_vm0, %v4280_v9  ;;  %v3307_v37 = vpop.f32.mrf.mxu0 }
 0x20e   : > { %v4148_v22 = vpop.permute.xlu0 %4147  ;;  %v3372_v26 = vmax.f32 %v3316_v56, 0.0  ;;  %v3308_v21 = vadd.f32 %v6667_v40, %v3307_v37 }
 0x20f   : > { %v4084_v34 = vpop.permute.xlu1 %4083  ;;  %v4945_v35 = vpop.f32.mrf.mxu0 }
 0x210   : > { %v4265_v51 = vsel %vm4257_vm9, %v4248_v57, %v4084_v34  ;;  %3389 = vst.msk [vmem:[%s6681_s13 + $0x10] sm:$0xff] %vm3386_vm2, %v3372_v26  ;;  %v3370_v59 = vmax.f32 %v3308_v21, 0.0  ;;  %v3319_v54 = vadd.f32 %v4945_v35, %v6667_v40 }
 0x211   : > { %v4282_v7 = vsel %vm4274_vm5, %v4265_v51, %v4148_v22  ;;  %v3310_v42 = vpop.f32.mrf.mxu0 }
 0x212   : > { %4973 = vmatmul.mubr.msk.bf16.gmra.mxu1 %vm4334_vm0, %v4282_v7  ;;  %3387 = vst.msk [vmem:[%s6681_s13] sm:$0xff] %vm3386_vm2, %v3370_v59  ;;  %v3373_v2 = vmax.f32 %v3319_v54, 0.0  ;;  %v3311_v55 = vadd.f32 %v6667_v40, %v3310_v42 }
 0x213   : > { %v3575_v52 = vpop.permute.xlu1 %3574  ;;  %v3894_v41 = vpop.permute.xlu0 %3893 }
 0x214   : > { %3390 = vst.msk [vmem:[%s6681_s13 + $0x18] sm:$0xff] %vm3386_vm2, %v3373_v2  ;;  %v3371_v0 = vmax.f32 %v3311_v55, 0.0  ;;  %v4168_v30 = vsel %vm3244_vm13, %v6397_v53, %v3575_v52 }
 0x215   : > { %v4184_v17 = vsel %vm3386_vm2, %v4168_v30, %v3640_v36 }
 0x216   : > { %3388 = vst.msk [vmem:[%s6681_s13 + $0x8] sm:$0xff] %vm3386_vm2, %v3371_v0  ;;  %v4201_v16 = vsel %vm4189_vm7, %v4184_v17, %v3696_v3 }
 0x217   : > { %v3896_v25 = vpop.permute.xlu1 %3895  ;;  %v3950_v45 = vpop.permute.xlu0 %3949 }
 0x21b   : > { %v3952_v11 = vpop.permute.xlu1 %3951  ;;  %v3830_v63 = vpop.permute.xlu0 %3829 }
 0x21c   : > { %v4216_v49 = vsel %vm4206_vm8, %v4199_v61, %v3830_v63 }
 0x21d   : > { %v4233_v62 = vsel %vm4223_vm14, %v4216_v49, %v3894_v41 }
 0x21e   : > { %v4250_v27 = vsel %vm4240_vm3, %v4233_v62, %v3950_v45 }
 0x21f   : > { %v3700_v28 = vpop.permute.xlu1 %3699  ;;  %v4150_v46 = vpop.permute.xlu0 %4149 }
 0x223   : > { %v3832_v33 = vpop.permute.xlu1 %3831  ;;  %v3642_v20 = vpop.permute.xlu0 %3641 }
 0x224   : > { %v4218_v53 = vsel %vm4206_vm8, %v4201_v16, %v3832_v33 }
 0x225   : > { %v4235_v32 = vsel %vm4223_vm14, %v4218_v53, %v3896_v25 }
 0x226   : > { %v4252_v23 = vsel %vm4240_vm3, %v4235_v32, %v3952_v11 }
 0x227   : > { %v3577_v48 = vpop.permute.xlu1 %3576  ;;  %v3698_v14 = vpop.permute.xlu0 %3697 }
 0x228   : > { %v4170_v6 = vsel %vm3244_vm13, %v6501_v4, %v3577_v48 }
 0x229   : > { %v4186_v37 = vsel %vm3386_vm2, %v4170_v6, %v3642_v20 }
 0x22a   : > { %v4203_v26 = vsel %vm4189_vm7, %v4186_v37, %v3698_v14 }
 0x22b   : > { %v3644_v13 = vpop.permute.xlu1 %3643  ;;  %v3954_v18 = vpop.permute.xlu0 %3953 }
 0x22c   : > { %v4948_v29 = vpop.f32.mrf.mxu1 }
 0x22d   : > { %v3332_v8 = vadd.f32 %v4948_v29, %v6667_v40 }
 0x22e   : > { %v3323_v5 = vpop.f32.mrf.mxu1 }
 0x22f   : > { %v3376_v47 = vmax.f32 %v3332_v8, 0.0  ;;  %v3900_v10 = vpop.permute.xlu1 %3899  ;;  %v4086_v43 = vpop.permute.xlu0 %4085  ;;  %v3324_v39 = vadd.f32 %v6667_v40, %v3323_v5 }
 0x230   : > { %v4267_v12 = vsel %vm4257_vm9, %v4250_v27, %v4086_v43  ;;  %v4949_v19 = vpop.f32.mrf.mxu1 }
 0x231   : > { %3393 = vst.msk [vmem:[%s6681_s13 + $0x30] sm:$0xff] %vm3386_vm2, %v3376_v47  ;;  %v3374_v50 = vmax.f32 %v3324_v39, 0.0  ;;  %v3335_v36 = vadd.f32 %v4949_v19, %v6667_v40  ;;  %v4284_v31 = vsel %vm4274_vm5, %v4267_v12, %v4150_v46 }
 0x232   : > { %4976 = vmatprep.mubr.msk.bf16.mxu1 %vm4334_vm0, %v4284_v31  ;;  %v3326_v44 = vpop.f32.mrf.mxu1 }
 0x233   : > { %3391 = vst.msk [vmem:[%s6681_s13 + $0x20] sm:$0xff] %vm3386_vm2, %v3374_v50  ;;  %v3377_v58 = vmax.f32 %v3335_v36, 0.0  ;;  %v4088_v3 = vpop.permute.xlu1 %4087  ;;  %v4152_v1 = vpop.permute.xlu0 %4151  ;;  %v3327_v38 = vadd.f32 %v6667_v40, %v3326_v44 }
 0x234   : > { %v4269_v9 = vsel %vm4257_vm9, %v4252_v23, %v4088_v3 }
 0x235   : > { %3394 = vst.msk [vmem:[%s6681_s13 + $0x38] sm:$0xff] %vm3386_vm2, %v3377_v58  ;;  %v4286_v22 = vsel %vm4274_vm5, %v4269_v9, %v4152_v1  ;;  %v3375_v56 = vmax.f32 %v3327_v38, 0.0 }
 0x236   : > { %4977 = vmatmul.mubr.msk.bf16.gmra.mxu1 %vm4334_vm0, %v4286_v22 }
 0x237   : > { %3392 = vst.msk [vmem:[%s6681_s13 + $0x28] sm:$0xff] %vm3386_vm2, %v3375_v56  ;;  %v3579_v57 = vpop.permute.xlu1 %3578  ;;  %v3898_v34 = vpop.permute.xlu0 %3897 }
 0x238   : > { %v4172_v51 = vsel %vm3244_vm13, %v6531_v24, %v3579_v57 }
 0x239   : > { %v4188_v7 = vsel %vm3386_vm2, %v4172_v51, %v3644_v13 }
 0x23a   : > { %v4205_v41 = vsel %vm4189_vm7, %v4188_v7, %v3700_v28 }
 0x23b   : > { %v3836_v4 = vpop.permute.xlu1 %3835  ;;  %v3834_v21 = vpop.permute.xlu0 %3833 }
 0x23c   : > { %v4220_v35 = vsel %vm4206_vm8, %v4203_v26, %v3834_v21  ;;  %v4222_v0 = vsel %vm4206_vm8, %v4205_v41, %v3836_v4 }
 0x23d   : > { %v4237_v59 = vsel %vm4223_vm14, %v4220_v35, %v3898_v34  ;;  %v4952_v54 = vpop.f32.mrf.mxu1  ;;  %v4239_v60 = vsel %vm4223_vm14, %v4222_v0, %v3900_v10 }
 0x23e   : > { %v3348_v52 = vadd.f32 %v4952_v54, %v6667_v40  ;;  %v4254_v55 = vsel %vm4240_vm3, %v4237_v59, %v3954_v18 }
 0x23f   : > { %v3956_v2 = vpop.permute.xlu1 %3955  ;;  %v4090_v42 = vpop.permute.xlu0 %4089 }
 0x240   : > { %v3380_v24 = vmax.f32 %v3348_v52, 0.0  ;;  %v3339_v25 = vpop.f32.mrf.mxu1  ;;  %v4271_v63 = vsel %vm4257_vm9, %v4254_v55, %v4090_v42  ;;  %v4256_v61 = vsel %vm4240_vm3, %v4239_v60, %v3956_v2 }
 0x241   : > { %v3340_v45 = vadd.f32 %v6667_v40, %v3339_v25 }
 0x242   : > { %3397 = vst.msk [vmem:[%s6681_s13 + $0x50] sm:$0xff] %vm3386_vm2, %v3380_v24  ;;  %v4953_v11 = vpop.f32.mrf.mxu1 }
 0x243   : > { %v3378_v46 = vmax.f32 %v3340_v45, 0.0  ;;  %v4092_v33 = vpop.permute.xlu1 %4091  ;;  %v3351_v28 = vadd.f32 %v4953_v11, %v6667_v40  ;;  %v4154_v20 = vpop.permute.xlu0 %4153 }
 0x244   : > { %v4288_v15 = vsel %vm4274_vm5, %v4271_v63, %v4154_v20  ;;  %v3342_v30 = vpop.f32.mrf.mxu1  ;;  %v4273_v17 = vsel %vm4257_vm9, %v4256_v61, %v4092_v33 }
 0x245   : > { %3395 = vst.msk [vmem:[%s6681_s13 + $0x40] sm:$0xff] %vm3386_vm2, %v3378_v46  ;;  %v3381_v48 = vmax.f32 %v3351_v28, 0.0  ;;  %v3343_v14 = vadd.f32 %v6667_v40, %v3342_v30  ;;  %4980 = vmatprep.mubr.msk.bf16.mxu1 %vm4334_vm0, %v4288_v15 }
 0x247   : > { %3398 = vst.msk [vmem:[%s6681_s13 + $0x58] sm:$0xff] %vm3386_vm2, %v3381_v48  ;;  %v3379_v49 = vmax.f32 %v3343_v14, 0.0  ;;  %v4156_v13 = vpop.permute.xlu1 %4155 }
 0x248   : > { %v4290_v18 = vsel %vm4274_vm5, %v4273_v17, %v4156_v13 }
 0x249   : > { %3396 = vst.msk [vmem:[%s6681_s13 + $0x48] sm:$0xff] %vm3386_vm2, %v3379_v49  ;;  %4981 = vmatmul.mubr.msk.bf16.gmra.mxu1 %vm4334_vm0, %v4290_v18 }
 0x262   : > { %v4956_v62 = vpop.f32.mrf.mxu1 }
 0x263   : > { %v3364_v16 = vadd.f32 %v4956_v62, %v6667_v40 }
 0x264   : > { %v3355_v29 = vpop.f32.mrf.mxu1 }
 0x265   : > { %v3384_v53 = vmax.f32 %v3364_v16, 0.0  ;;  %v3356_v8 = vadd.f32 %v6667_v40, %v3355_v29 }
 0x266   : > { %v4957_v5 = vpop.f32.mrf.mxu1 }
 0x267   : > { %3401 = vst.msk [vmem:[%s6681_s13 + $0x70] sm:$0xff] %vm3386_vm2, %v3384_v53  ;;  %v3382_v47 = vmax.f32 %v3356_v8, 0.0  ;;  %v3367_v10 = vadd.f32 %v4957_v5, %v6667_v40 }
 0x268   : > { %v3358_v27 = vpop.f32.mrf.mxu1 }
 0x269   : > { %3399 = vst.msk [vmem:[%s6681_s13 + $0x60] sm:$0xff] %vm3386_vm2, %v3382_v47  ;;  %v3385_v43 = vmax.f32 %v3367_v10, 0.0  ;;  %v3359_v39 = vadd.f32 %v6667_v40, %v3358_v27 }
 0x26b   : > { %3402 = vst.msk [vmem:[%s6681_s13 + $0x78] sm:$0xff] %vm3386_vm2, %v3385_v43  ;;  %v3383_v32 = vmax.f32 %v3359_v39, 0.0 }
 0x26d   : > { %3400 = vst.msk [vmem:[%s6681_s13 + $0x68] sm:$0xff] %vm3386_vm2, %v3383_v32  ;;  %s5147_s13 = sshll.u32 %s5277_s9, 4  ;;  %s5148_s13 = int_to_ptr.vmem [resolvable:$false] %s5147_s13 }
 0x26e   : > { %s5149_s24 = scalar_lea.vmem %s5148_s13, 4096  ;;  %p5150_p2 = scmp.lt.s32.totalorder %s6775_s25, %s5148_s13 }
 0x26f   : > { %p5151_p4 = scmp.lt.s32.totalorder %s5149_s24, %s5143_s30 }
 0x271   : > { %p5152_p5 = por %p5151_p4, %p5150_p2 }
 0x273   : > { %p5153_p6 = pnand %p5152_p5, %p5146_p1 }
 0x275   : > { %5156 = shalt.err (!%p5153_p6)
}
 0x276   : > { %s5157_s22 = scalar_lea.hbm %s6782_s0, 2048  ;;  %s5161_s9 = scalar_lea.hbm %s6936_s7, 8192 }
 0x277   : > { %p5158_p7 = scmp.ne.s32.totalorder %s6782_s0, %s5157_s22  ;;  %p5162_p11 = scmp.lt.s32.totalorder %s6782_s0, %s6936_s7 }
 0x278   : > { %p5163_p12 = scmp.lt.s32.totalorder %s5161_s9, %s5157_s22 }
 0x279   : > { %p5159_p9 = pnand %p5158_p7, %p5376_p3 }
 0x27a   : > { %p5164_p13 = por %p5163_p12, %p5162_p11 }
 0x27b   : > { %p5160_p10 = pneg %p5159_p9 }
 0x27d   : > { %p5165_p0 = pnand %p5164_p13, %p5160_p10 }
 0x27f   : > { %5168 = shalt.err (!%p5165_p0)
}
 0x280   : > { %s6945_s30 = smov 128   ;;  %s7002_s13 = smov 8   ;;  %v6813_v40 = vld [vmem:[%s6935_s6] ss:$0 sm:$0xff] }
 0x281   : > { %s7003_s24 = scalar_lea.sflag [#allocation4], %s6660_s17  ;;  %s7004_s1 = sshll.u32 %s6660_s17, 7 }
 0x282   : > { %4991 = dma.vmem_to_hbm [thread:$0]  (%p5376_p3), %s6775_s25, 2048, %s6782_s0, %s7003_s24, %s6945_s30, %s6945_s30, %s7002_s13  }
 0x283   : > { %s6819_s14 = scalar_lea.vmem [#allocation5], %s7004_s1  ;;  %s7005_s25 = sshll.u32 %s6771_s21, 7 }
 0x284   : > { %s4524_s0 = sshll.u32 %s6819_s14, 4  ;;  %s6871_s24 = scalar_lea.hbm %s6937_s8, %s7005_s25  ;;  %s6873_s0 = int_to_ptr.vmem [resolvable:$true] %s4524_s0 }
 0x285   : > { %s4489_s20 = scalar_lea.sflag [#allocation6], %s6660_s17  ;;  %s5169_s26 = scalar_lea.vmem %s6873_s0, 2048 }
 0x286   : > { %p5170_p1 = scmp.ne.s32.totalorder %s6873_s0, %s5169_s26  ;;  %s5279_s1 = smov [#allocation5]  }
 0x287   : > { %s5173_s21 = sshll.u32 %s5279_s1, 4  ;;  %s5174_s21 = int_to_ptr.vmem [resolvable:$false] %s5173_s21 }
 0x288   : > { %p5171_p2 = pnand %p5170_p1, %p5376_p3  ;;  %s5175_s30 = scalar_lea.vmem %s5174_s21, 4096 }
 0x289   : > { %p5176_p5 = scmp.lt.s32.totalorder %s6873_s0, %s5174_s21  ;;  %p5177_p6 = scmp.lt.s32.totalorder %s5175_s30, %s5169_s26 }
 0x28a   : > { %p5172_p4 = pneg %p5171_p2 }
 0x28b   : > { %p5178_p7 = por %p5177_p6, %p5176_p5 }
 0x28d   : > { %p5179_p9 = pnand %p5178_p7, %p5172_p4 }
 0x2b1   : > { %v4970_v12 = vpop.f32.mrf.mxu1 }
 0x2b2   : > { %v4397_v19 = vadd.f32 %v4970_v12, %v6813_v40 }
 0x2b3   : > { %v4388_v50 = vpop.f32.mrf.mxu1 }
 0x2b4   : > { %v4453_v36 = vmax.f32 %v4397_v19, 0.0  ;;  %v4389_v31 = vadd.f32 %v6813_v40, %v4388_v50 }
 0x2b5   : > { %v4971_v44 = vpop.f32.mrf.mxu1 }
 0x2b6   : > { %4469 = vst.msk [vmem:[%s6819_s14 + $0x10] sm:$0xff] %vm3386_vm2, %v4453_v36  ;;  %v4451_v58 = vmax.f32 %v4389_v31, 0.0  ;;  %v4400_v23 = vadd.f32 %v4971_v44, %v6813_v40 }
 0x2b7   : > { %v4391_v3 = vpop.f32.mrf.mxu1 }
 0x2b8   : > { %4467 = vst.msk [vmem:[%s6819_s14] sm:$0xff] %vm3386_vm2, %v4451_v58  ;;  %v4454_v1 = vmax.f32 %v4400_v23, 0.0  ;;  %v4392_v38 = vadd.f32 %v6813_v40, %v4391_v3 }
 0x2ba   : > { %4470 = vst.msk [vmem:[%s6819_s14 + $0x18] sm:$0xff] %vm3386_vm2, %v4454_v1  ;;  %v4452_v9 = vmax.f32 %v4392_v38, 0.0 }
 0x2bc   : > { %4468 = vst.msk [vmem:[%s6819_s14 + $0x8] sm:$0xff] %vm3386_vm2, %v4452_v9 }
 0x2d2   : > { %v4974_v6 = vpop.f32.mrf.mxu1 }
 0x2d3   : > { %v4413_v22 = vadd.f32 %v4974_v6, %v6813_v40 }
 0x2d4   : > { %v4404_v56 = vpop.f32.mrf.mxu1 }
 0x2d5   : > { %v4457_v57 = vmax.f32 %v4413_v22, 0.0  ;;  %v4405_v34 = vadd.f32 %v6813_v40, %v4404_v56 }
 0x2d6   : > { %v4975_v37 = vpop.f32.mrf.mxu1 }
 0x2d7   : > { %4473 = vst.msk [vmem:[%s6819_s14 + $0x30] sm:$0xff] %vm3386_vm2, %v4457_v57  ;;  %v4455_v51 = vmax.f32 %v4405_v34, 0.0  ;;  %v4416_v26 = vadd.f32 %v4975_v37, %v6813_v40 }
 0x2d8   : > { %v4407_v4 = vpop.f32.mrf.mxu1 }
 0x2d9   : > { %4471 = vst.msk [vmem:[%s6819_s14 + $0x20] sm:$0xff] %vm3386_vm2, %v4455_v51  ;;  %v4458_v21 = vmax.f32 %v4416_v26, 0.0  ;;  %v4408_v7 = vadd.f32 %v6813_v40, %v4407_v4 }
 0x2db   : > { %4474 = vst.msk [vmem:[%s6819_s14 + $0x38] sm:$0xff] %vm3386_vm2, %v4458_v21  ;;  %v4456_v35 = vmax.f32 %v4408_v7, 0.0 }
 0x2dd   : > { %4472 = vst.msk [vmem:[%s6819_s14 + $0x28] sm:$0xff] %vm3386_vm2, %v4456_v35 }
 0x2f6   : > { %v4978_v59 = vpop.f32.mrf.mxu1 }
 0x2f7   : > { %v4429_v54 = vadd.f32 %v4978_v59, %v6813_v40 }
 0x2f8   : > { %v4420_v52 = vpop.f32.mrf.mxu1 }
 0x2f9   : > { %v4461_v41 = vmax.f32 %v4429_v54, 0.0  ;;  %v4421_v2 = vadd.f32 %v6813_v40, %v4420_v52 }
 0x2fa   : > { %v4979_v42 = vpop.f32.mrf.mxu1 }
 0x2fb   : > { %4477 = vst.msk [vmem:[%s6819_s14 + $0x50] sm:$0xff] %vm3386_vm2, %v4461_v41  ;;  %v4459_v24 = vmax.f32 %v4421_v2, 0.0  ;;  %v4432_v55 = vadd.f32 %v4979_v42, %v6813_v40 }
 0x2fc   : > { %v4423_v25 = vpop.f32.mrf.mxu1 }
 0x2fd   : > { %4475 = vst.msk [vmem:[%s6819_s14 + $0x40] sm:$0xff] %vm3386_vm2, %v4459_v24  ;;  %v4462_v45 = vmax.f32 %v4432_v55, 0.0  ;;  %v4424_v0 = vadd.f32 %v6813_v40, %v4423_v25 }
 0x2ff   : > { %4478 = vst.msk [vmem:[%s6819_s14 + $0x58] sm:$0xff] %vm3386_vm2, %v4462_v45  ;;  %v4460_v11 = vmax.f32 %v4424_v0, 0.0 }
 0x301   : > { %4476 = vst.msk [vmem:[%s6819_s14 + $0x48] sm:$0xff] %vm3386_vm2, %v4460_v11 }
 0x309   : > { %v4982_v63 = vpop.f32.mrf.mxu1 }
 0x30a   : > { %v4445_v46 = vadd.f32 %v4982_v63, %v6813_v40 }
 0x30b   : > { %v4436_v33 = vpop.f32.mrf.mxu1 }
 0x30c   : > { %v4465_v28 = vmax.f32 %v4445_v46, 0.0  ;;  %v4437_v20 = vadd.f32 %v6813_v40, %v4436_v33 }
 0x30d   : > { %v4983_v15 = vpop.f32.mrf.mxu1 }
 0x30e   : > { %4481 = vst.msk [vmem:[%s6819_s14 + $0x70] sm:$0xff] %vm3386_vm2, %v4465_v28  ;;  %v4463_v30 = vmax.f32 %v4437_v20, 0.0  ;;  %v4448_v60 = vadd.f32 %v4983_v15, %v6813_v40 }
 0x30f   : > { %v4439_v48 = vpop.f32.mrf.mxu1 }
 0x310   : > { %4479 = vst.msk [vmem:[%s6819_s14 + $0x60] sm:$0xff] %vm3386_vm2, %v4463_v30  ;;  %v4466_v14 = vmax.f32 %v4448_v60, 0.0  ;;  %v4440_v61 = vadd.f32 %v6813_v40, %v4439_v48 }
 0x312   : > { %4482 = vst.msk [vmem:[%s6819_s14 + $0x78] sm:$0xff] %vm3386_vm2, %v4466_v14  ;;  %v4464_v17 = vmax.f32 %v4440_v61, 0.0 }
 0x314   : > { %4480 = vst.msk [vmem:[%s6819_s14 + $0x68] sm:$0xff] %vm3386_vm2, %v4464_v17 }
 0x315   : > { %5182 = shalt.err (!%p5179_p9)
}
 0x316   : > { %s5183_s14 = scalar_lea.hbm %s6871_s24, 2048  ;;  %s5187_s22 = scalar_lea.hbm %s6937_s8, 8192 }
 0x317   : > { %p5184_p10 = scmp.ne.s32.totalorder %s6871_s24, %s5183_s14  ;;  %p5188_p13 = scmp.lt.s32.totalorder %s6871_s24, %s6937_s8 }
 0x318   : > { %p5189_p0 = scmp.lt.s32.totalorder %s5187_s22, %s5183_s14 }
 0x319   : > { %p5185_p11 = pnand %p5184_p10, %p5376_p3 }
 0x31a   : > { %p5190_p1 = por %p5189_p0, %p5188_p13 }
 0x31b   : > { %p5186_p12 = pneg %p5185_p11 }
 0x31d   : > { %p5191_p2 = pnand %p5190_p1, %p5186_p12 }
 0x31f   : > { %5194 = shalt.err (!%p5191_p2)
}
 0x320   : > { %s7006_s30 = smov 128  }
 0x321   : > { %4992 = dma.vmem_to_hbm [thread:$0]  (%p5376_p3), %s6873_s0, 2048, %s6871_s24, %s4489_s20, %s7006_s30, %s7006_s30, %s7002_s13  }
 0x322 PF: > { %p5002_p4 = scmp.ge.s32.totalorder %s5265_s12, 2  ;;  %s4539_s26 = sand.u32 1, %s5237_s27  }
 0x323   : > { %s4540_s21 = scalar_lea.sflag [#allocation4], %s4539_s26 }
 0x324   : > { %p4996_p5 = pnand %p5002_p4, %p5385_p8 }
 0x326   : > { %p4997_p6 = pneg %p4996_p5 }
 0x328   : > { %5228 = dma.done.wait (%p4997_p6), %s4540_s21, 2048  }
 0x329   : > { %5230 = vsyncadd (%p4997_p6), %s4540_s21, 4294965248  ;;  %s4549_s14 = scalar_lea.sflag [#allocation6], %s4539_s26 }
 0x32a   : > { %5232 = dma.done.wait (%p4997_p6), %s4549_s14, 2048  }
 0x32b   : > { %5234 = vsyncadd (%p4997_p6), %s4549_s14, 4294965248  ;;  %s25_s12 = sadd.s32 1, %s5265_s12   ;;  %s7007_s27 = smov %s5241_s28 }
 0x32c   : > { %p22_p7 = scmp.ge.s32.totalorder %s25_s12, 6   ;;  %s7008_s28 = smov %s5245_s29 }
 0x32d   : > { %s7009_s29 = smov %s5394_s23  ;;  %s7010_s30 = smov %s5257_s10 }
 0x32e   : > { %s7011_s9 = smov %s5261_s11  ;;  %s7012_s10 = smov %s7015_s15 }
 0x32f   : > { %s7013_s11 = smov %s7019_s16  ;;  %24 = sbr.rel (!%p22_p7) target bundleno = 10 (0xa), region = 103 }
 0x334   :  { %4554 = vsyncpa [#allocation4], 1 }
 0x335   :  { %4556 = vsyncpa [#allocation4 + $0x1], 1 }
 0x336   :  { %4557 = vsyncpa [#allocation6], 1 }
 0x337   :  { %4559 = vsyncpa [#allocation6 + $0x1], 1 }

</bundles_post_ra>
